<compile_context>
chip_gen: v5e
topology: v5e:2x2
jax: 0.10.0
libtpu: 0.0.40
codegen_flags: <defaults>
</compile_context>

<pallas_src>
import functools

import jax
import jax.numpy as jnp
import numpy as np
from jax.experimental import pallas as pl
from jax.experimental.pallas import tpu as pltpu


# v7x-safe cap; actual per-layer footprints are <= ~20 MiB by construction.
# TODO(synk): on v5e/v6e (128 MiB physical VMEM) this could be raised to
# 64-96 MiB together with larger row tiles for a few extra % of roofline.
_VMEM_LIMIT = 32 * 1024 * 1024
_LEAKY_SLOPE = 0.1


def _round_up(x, m):
    return ((x + m - 1) // m) * m


# ---------------------------------------------------------------------------
# Tile pickers: avoid padding whenever the real dims already tile cleanly.
# ---------------------------------------------------------------------------
def _pick_tm(m, cap=512):
    if m <= cap:
        t = _round_up(m, 8)
        return t, t
    t = cap - cap % 16
    while t >= 16:                       # largest 16-multiple divisor <= cap
        if m % t == 0:
            break
        t -= 16
    if t >= 128:
        return t, m                      # clean tiling, no padded copy
    return cap, _round_up(m, cap)


def _pick_tk(k, cap=2048):
    if k <= cap:
        return k, k                      # full K, no pad
    t = cap - cap % 128
    while t >= 128:                      # largest 128-multiple divisor <= cap
        if k % t == 0:
            return t, k
        t -= 128
    return cap, _round_up(k, cap)


def _pick_tn(n):
    if n <= 512:
        return n, n
    return 512, _round_up(n, 512)


# ---------------------------------------------------------------------------
# Tiled matmul kernel with fused bias + LeakyReLU (+ sigmoid for the last FC)
#   grid = (M tiles, N tiles, K tiles), K innermost (f32 accumulator in VMEM)
# ---------------------------------------------------------------------------
def _mm_kernel(x_ref, w_ref, b_ref, o_ref, acc_ref, *, act, nk):
    d = jnp.dot(x_ref[...], w_ref[...], preferred_element_type=jnp.float32)

    def epilogue(y):
        y = y + b_ref[...]                            # (tm, tn) + (1, tn)
        y = jnp.where(y > 0, y, _LEAKY_SLOPE * y)     # LeakyReLU(0.1)
        if act == "leaky_sigmoid":
            y = jax.nn.sigmoid(y)                     # sigmoid(leaky(.))
        o_ref[...] = y.astype(o_ref.dtype)

    if nk == 1:                                       # single K step: no acc
        epilogue(d)
    else:
        kk = pl.program_id(2)

        @pl.when(kk == 0)
        def _():
            acc_ref[...] = d                          # '=' instead of zero+'+='

        @pl.when(kk > 0)
        def _():
            acc_ref[...] += d

        @pl.when(kk == nk - 1)
        def _():
            epilogue(acc_ref[...])


@functools.partial(jax.jit, static_argnums=(3, 4))
def matmul_bias_act(x, w, b, act="leaky", out_dtype=jnp.bfloat16):
    """act(x @ w + b).  x:(M,K) bf16, w:(K,N) bf16 ((in,out) layout), b:(N,) f32."""
    m, k = x.shape
    k2, n = w.shape
    assert k == k2
    tm, mp = _pick_tm(m)
    tk, kp = _pick_tk(k)
    tn, np_ = _pick_tn(n)

    if (mp, kp) != (m, k):
        x = jnp.pad(x, ((0, mp - m), (0, kp - k)))
    if (kp, np_) != (k, n):
        w = jnp.pad(w, ((0, kp - k), (0, np_ - n)))
    if np_ != n:
        b = jnp.pad(b, (0, np_ - n))
    b2 = b.reshape(1, np_).astype(jnp.float32)
    nk = kp // tk

    out = pl.pallas_call(
        functools.partial(_mm_kernel, act=act, nk=nk),
        out_shape=jax.ShapeDtypeStruct((mp, np_), out_dtype),
        grid_spec=pltpu.PrefetchScalarGridSpec(
            num_scalar_prefetch=0,
            grid=(mp // tm, np_ // tn, nk),
            in_specs=[
                pl.BlockSpec((tm, tk), lambda i, j, kk: (i, kk)),
                pl.BlockSpec((tk, tn), lambda i, j, kk: (kk, j)),
                pl.BlockSpec((1, tn), lambda i, j, kk: (0, j)),
            ],
            out_specs=pl.BlockSpec((tm, tn), lambda i, j, kk: (i, j)),
            scratch_shapes=[pltpu.VMEM((tm, tn), jnp.float32)],
        ),
        compiler_params=pltpu.CompilerParams(
            dimension_semantics=("parallel", "parallel", "arbitrary"),
            vmem_limit_bytes=_VMEM_LIMIT),
    )(x, w, b2)
    if (mp, np_) != (m, n):
        out = out[:m, :n]
    return out


# ---------------------------------------------------------------------------
# Fused stride-1 KxK conv + LeakyReLU kernel (no im2col patch matrix in HBM).
# The padded NHWC slab (bf16) of one batch element is resident in VMEM; the
# kernel gathers the K*K taps in-kernel and runs per-tap (rows,Cin)@(Cin,tn)
# MXU matmuls into an f32 VMEM accumulator.
# ---------------------------------------------------------------------------
def _conv_s1_kernel(x_ref, w_ref, b_ref, o_ref, acc_ref, *,
                    k, cin, th, wo, row_axis):
    r0 = pl.program_id(row_axis) * th
    for ih in range(k):
        part = None
        for iw in range(k):
            xs = x_ref[0, pl.ds(r0 + ih, th), iw:iw + wo, :]     # (th, wo, cin) bf16
            xs = xs.reshape(th * wo, cin)
            wt = w_ref[(ih * k + iw) * cin:(ih * k + iw + 1) * cin, :]
            d = jnp.dot(xs, wt, preferred_element_type=jnp.float32)
            part = d if part is None else part + d               # sum taps as values
        if ih == 0:
            acc_ref[...] = part                                  # no zero-fill pass
        else:
            acc_ref[...] += part
    y = acc_ref[...] + b_ref[...]
    y = jnp.where(y > 0, y, _LEAKY_SLOPE * y)                    # LeakyReLU(0.1)
    o_ref[...] = y.reshape(o_ref.shape).astype(o_ref.dtype)


def _pick_th(ho, wo, target_rows=2048):
    if ho * wo <= target_rows:
        return ho
    best = 1
    for t in range(1, ho + 1):
        if ho % t == 0 and t * wo <= target_rows:
            best = t
    return best


def _pick_conv_tn(cout):
    if cout <= 512:
        return cout
    for t in (256, 512, 128):       # 256 for 1024-out layers: v7x VMEM headroom
        if cout % t == 0:
            return t
    return cout


@functools.partial(jax.jit, static_argnums=(3, 4))
def conv2d_fused_s1(x, w2d, b, k, pad):
    n, h, w_sz, cin = x.shape
    cout = w2d.shape[1]
    ho, wo = h + 2 * pad - k + 1, w_sz + 2 * pad - k + 1
    hp, wp = h + 2 * pad, w_sz + 2 * pad
    xp = jnp.pad(x, ((0, 0), (pad, pad), (pad, pad), (0, 0)))
    th = _pick_th(ho, wo)
    tn = _pick_conv_tn(cout)
    b2 = b.reshape(1, cout).astype(jnp.float32)
    gi, gj = ho // th, cout // tn

    # Estimated HBM traffic of the two grid orders; pick the cheaper one so the
    # big weight block of the 1024-channel layers stays resident across batch.
    esz = x.dtype.itemsize
    slab_b = hp * wp * cin * esz
    wtot_b = k * k * cin * cout * w2d.dtype.itemsize
    order_a = n * slab_b + (n * gi * wtot_b if gj > 1 else wtot_b)
    order_b = gi * gj * n * slab_b + gi * wtot_b
    batch_inner = (n > 1) and (order_b < order_a)

    if batch_inner:
        grid = (gi, gj, n)
        row_axis = 0
        x_map = lambda i, j, bi: (bi, 0, 0, 0)
        w_map = lambda i, j, bi: (0, j)
        o_map = lambda i, j, bi: (bi, i, 0, j)
    else:
        grid = (n, gi, gj)
        row_axis = 1
        x_map = lambda bi, i, j: (bi, 0, 0, 0)
        w_map = lambda bi, i, j: (0, j)
        o_map = lambda bi, i, j: (bi, i, 0, j)

    return pl.pallas_call(
        functools.partial(_conv_s1_kernel, k=k, cin=cin, th=th, wo=wo,
                          row_axis=row_axis),
        out_shape=jax.ShapeDtypeStruct((n, ho, wo, cout), x.dtype),
        grid_spec=pltpu.PrefetchScalarGridSpec(
            num_scalar_prefetch=0,
            grid=grid,
            in_specs=[
                pl.BlockSpec((1, hp, wp, cin), x_map),
                pl.BlockSpec((k * k * cin, tn), w_map),
                pl.BlockSpec((1, tn), w_map),
            ],
            out_specs=pl.BlockSpec((1, th, wo, tn), o_map),
            scratch_shapes=[pltpu.VMEM((th * wo, tn), jnp.float32)],
        ),
        compiler_params=pltpu.CompilerParams(
            dimension_semantics=("parallel", "parallel", "parallel"),
            vmem_limit_bytes=_VMEM_LIMIT),
    )(xp, w2d, b2)


@functools.partial(jax.jit, static_argnums=(3, 4, 5))
def conv2d_im2col(x, w2d, b, k, stride, pad):
    """Conv + LeakyReLU via bf16 im2col + tiled matmul.  Used for the two
    stride-2 convs, all 1x1 convs (free reshape) and as fused-path fallback."""
    n, h, w_sz, cin = x.shape
    cout = w2d.shape[1]
    ho = (h + 2 * pad - k) // stride + 1
    wo = (w_sz + 2 * pad - k) // stride + 1
    if k == 1 and stride == 1:
        pm = x.reshape(n * ho * wo, cin)                         # free reshape
    else:
        # TODO(synk): a fused strided-conv kernel would avoid this patch matrix
        # entirely (it is already bf16, so traffic is half of the old f32 path).
        xp = jnp.pad(x, ((0, 0), (pad, pad), (pad, pad), (0, 0))) if pad else x
        taps = []
        for ih in range(k):
            for iw in range(k):
                taps.append(xp[:, ih:ih + stride * ho:stride,
                               iw:iw + stride * wo:stride, :])
        pm = jnp.concatenate(taps, axis=-1).reshape(n * ho * wo, k * k * cin)
    y = matmul_bias_act(pm, w2d, b, "leaky")
    return y.reshape(n, ho, wo, cout)


_FUSED_CONV_OK = [True]


def conv2d_leaky(x, w2d, b, k, stride, pad):
    if k > 1 and stride == 1 and _FUSED_CONV_OK[0]:
        try:
            return conv2d_fused_s1(x, w2d, b, k, pad)
        except Exception:
            # TODO(synk): narrow to the Mosaic lowering exception type so real
            # shape/indexing bugs are not silently masked by the fallback.
            _FUSED_CONV_OK[0] = False
    return conv2d_im2col(x, w2d, b, k, stride, pad)


# ---------------------------------------------------------------------------
# 2x2 max pool, stride 2 (NHWC).  Single fused Pallas kernel: input is
# free-reshaped to (N, Ho, 2, Wo, 2C); the row pair is a major-dim slice and
# the column pair is a lane slice, so no strided HBM copies are materialized.
# ---------------------------------------------------------------------------
def _pool_kernel(x_ref, o_ref, *, c):
    v = x_ref[0]                                      # (bho, 2, wo, 2c)
    m = jnp.maximum(v[:, 0], v[:, 1])                 # max over the row pair
    o_ref[0] = jnp.maximum(m[..., :c], m[..., c:])    # max over the column pair


@jax.jit
def maxpool2x2_fused(x):
    n, h, w_sz, c = x.shape
    ho, wo = h // 2, w_sz // 2
    xr = x.reshape(n, ho, 2, wo, 2 * c)               # free reshape
    row_bytes = 2 * wo * 2 * c * x.dtype.itemsize
    bho = 1
    for t in range(1, ho + 1):                        # largest divisor <= ~4 MiB
        if ho % t == 0 and t * row_bytes <= 4 * 1024 * 1024:
            bho = t
    return pl.pallas_call(
        functools.partial(_pool_kernel, c=c),
        out_shape=jax.ShapeDtypeStruct((n, ho, wo, c), x.dtype),
        grid_spec=pltpu.PrefetchScalarGridSpec(
            num_scalar_prefetch=0,
            grid=(n, ho // bho),
            in_specs=[pl.BlockSpec((1, bho, 2, wo, 2 * c),
                                   lambda b, i: (b, i, 0, 0, 0))],
            out_specs=pl.BlockSpec((1, bho, wo, c), lambda b, i: (b, i, 0, 0)),
        ),
        compiler_params=pltpu.CompilerParams(
            dimension_semantics=("parallel", "parallel"),
            vmem_limit_bytes=_VMEM_LIMIT),
    )(xr)


# Fallback pool (the previous, known-good corner formulation).
def _max4_kernel(a_ref, b_ref, c_ref, d_ref, o_ref):
    o_ref[...] = jnp.maximum(jnp.maximum(a_ref[...], b_ref[...]),
                             jnp.maximum(c_ref[...], d_ref[...]))


@jax.jit
def maxpool2x2_corners(x):
    n, h, w_sz, c = x.shape
    ho, wo = h // 2, w_sz // 2
    m = n * ho * wo
    corners = [x[:, 0::2, 0::2, :], x[:, 0::2, 1::2, :],
               x[:, 1::2, 0::2, :], x[:, 1::2, 1::2, :]]
    corners = [v.reshape(m, c) for v in corners]
    tm = min(512, _round_up(m, 8))
    mp = _round_up(m, tm)
    if mp != m:
        corners = [jnp.pad(v, ((0, mp - m), (0, 0))) for v in corners]
    spec = pl.BlockSpec((tm, c), lambda i: (i, 0))
    out = pl.pallas_call(
        _max4_kernel,
        out_shape=jax.ShapeDtypeStruct((mp, c), x.dtype),
        grid_spec=pltpu.PrefetchScalarGridSpec(
            num_scalar_prefetch=0,
            grid=(mp // tm,),
            in_specs=[spec, spec, spec, spec],
            out_specs=pl.BlockSpec((tm, c), lambda i: (i, 0)),
        ),
        compiler_params=pltpu.CompilerParams(
            dimension_semantics=("parallel",),
            vmem_limit_bytes=_VMEM_LIMIT),
    )(*corners)
    return out[:m].reshape(n, ho, wo, c)


_FUSED_POOL_OK = [True]


def maxpool2x2(x):
    if _FUSED_POOL_OK[0]:
        try:
            return maxpool2x2_fused(x)
        except Exception:
            _FUSED_POOL_OK[0] = False
    return maxpool2x2_corners(x)


# ---------------------------------------------------------------------------
# YOLOv1 architecture: (cin, cout, kernel, stride, pad) for conv_0 .. conv_23
# ---------------------------------------------------------------------------
CONV_CFG = [
    (3, 64, 7, 2, 3), (64, 192, 3, 1, 1), (192, 128, 1, 1, 0),
    (128, 256, 3, 1, 1), (256, 256, 1, 1, 0), (256, 512, 3, 1, 1),
    (512, 256, 1, 1, 0), (256, 512, 3, 1, 1), (512, 256, 1, 1, 0),
    (256, 512, 3, 1, 1), (512, 256, 1, 1, 0), (256, 512, 3, 1, 1),
    (512, 256, 1, 1, 0), (256, 512, 3, 1, 1), (512, 512, 1, 1, 0),
    (512, 1024, 3, 1, 1), (1024, 512, 1, 1, 0), (512, 1024, 3, 1, 1),
    (1024, 512, 1, 1, 0), (512, 1024, 3, 1, 1),
    (1024, 1024, 3, 1, 1), (1024, 1024, 3, 2, 1),
    (1024, 1024, 3, 1, 1), (1024, 1024, 3, 1, 1),
]
POOL_AFTER = frozenset({0, 1, 5, 15})
FC_HIDDEN = 4096
FC_OUT = 7 * 7 * 30


def _feature_hw(img):
    s = img
    for i, (_, _, k, st, p) in enumerate(CONV_CFG):
        s = (s + 2 * p - k) // st + 1
        if i in POOL_AFTER:
            s //= 2
    return s


def init_params(key, img_size):
    """Weights are stored directly in matmul layout (bf16):
         conv: (kh*kw*cin, cout)  == torch weight.permute(2,3,1,0).reshape
         fc  : (fin, fout)        == torch weight.T
       FC1 is pre-padded to a 512-multiple output so no padded copy is ever
       materialized inside the forward pass."""
    params = {"convs": []}
    for i, (cin, cout, k, s, p) in enumerate(CONV_CFG):
        wkey, bkey = jax.random.split(jax.random.fold_in(key, i))
        bound = 1.0 / float(np.sqrt(cin * k * k))
        w = jax.random.uniform(wkey, (k * k * cin, cout), jnp.float32,
                               -bound, bound).astype(jnp.bfloat16)
        b = jax.random.uniform(bkey, (cout,), jnp.float32, -bound, bound)
        params["convs"].append((w, b, k, s, p))

    sf = _feature_hw(img_size)
    fin0 = sf * sf * CONV_CFG[-1][1]        # == 7*7*1024 for a 448x448 input
    fc_cfg = (("fc0", 100, fin0, FC_HIDDEN, FC_HIDDEN),
              ("fc1", 101, FC_HIDDEN, FC_OUT, _round_up(FC_OUT, 512)))
    for name, idx, fi, fo, fo_pad in fc_cfg:
        wkey, bkey = jax.random.split(jax.random.fold_in(key, idx))
        bound = 1.0 / float(np.sqrt(fi))
        w = jax.random.uniform(wkey, (fi, fo), jnp.float32, -bound, bound)
        b = jax.random.uniform(bkey, (fo,), jnp.float32, -bound, bound)
        if fo_pad != fo:                    # pre-pad once, outside the forward
            w = jnp.pad(w, ((0, 0), (0, fo_pad - fo)))
            b = jnp.pad(b, (0, fo_pad - fo))
        params[name] = (w.astype(jnp.bfloat16), b)
    return params


# ---------------------------------------------------------------------------
# Forward pass (matches the PyTorch YOLOv1.forward, eval mode)
# ---------------------------------------------------------------------------
def yolo_v1_forward(x_nchw, params):
    x = jnp.transpose(x_nchw, (0, 2, 3, 1)).astype(jnp.bfloat16)  # NCHW -> NHWC
    for i, (w, b, k, s, p) in enumerate(params["convs"]):
        x = conv2d_leaky(x, w, b, k, s, p)            # conv + LeakyReLU(0.1)
        if i in POOL_AFTER:
            x = maxpool2x2(x)

    n = x.shape[0]
    x = jnp.transpose(x, (0, 3, 1, 2)).reshape(n, -1)  # PyTorch NCHW flatten
    w0, b0 = params["fc0"]
    x = matmul_bias_act(x, w0, b0, "leaky")
    # TODO(synk): nn.Dropout(0.5) after conn_0 is identity (eval / inference).
    w1, b1 = params["fc1"]
    x = matmul_bias_act(x, w1, b1, "leaky_sigmoid", jnp.float32)
    x = x[:, :FC_OUT]                                  # drop pre-padded columns
    return x.reshape(-1, 7, 7, 30)


if __name__ == "__main__":
    key = jax.random.PRNGKey(0)
    pkey, xkey = jax.random.split(key)

    # Small 64x64 input keeps the run fast while exercising the full 24-conv
    # YOLOv1 stack + FC head.  With img=448 the derived FC input is exactly
    # 7*7*1024 as in the PyTorch module (the code computes it from the map).
    batch, img = 2, 64
    params = init_params(pkey, img)
    x = jax.random.normal(xkey, (batch, 3, img, img), dtype=jnp.float32)

    out = jax.block_until_ready(yolo_v1_forward(x, params))

    assert out.shape == (batch, 7, 7, 30), out.shape
    assert bool(jnp.all(jnp.isfinite(out)))
    assert bool(jnp.all((out >= 0.0) & (out <= 1.0)))   # sigmoid output range
    print("KERNEL_OK")
</pallas_src>

<mosaic_0001>
module attributes {stable_mosaic.version = 11 : i64} {
  func.func @_mm_kernel(%arg0: i32, %arg1: i32, %arg2: i32, %arg3: memref<512x147xbf16, #tpu.memory_space<vmem>>, %arg4: memref<147x64xbf16, #tpu.memory_space<vmem>>, %arg5: memref<1x64xf32, #tpu.memory_space<vmem>>, %arg6: memref<512x64xbf16, #tpu.memory_space<vmem>>, %arg7: memref<512x64xf32, #tpu.memory_space<vmem>>) attributes {dimension_semantics = [#tpu.dimension_semantics<parallel>, #tpu.dimension_semantics<parallel>, #tpu.dimension_semantics<arbitrary>], iteration_bounds = array<i64: 4, 1, 1>, scalar_prefetch = 0 : i64, scratch_operands = 1 : i64, tpu.core_type = #tpu.core_type<tc>, window_params = [{transform_indices = @transform_0, window_bounds = array<i64: 512, 147>}, {transform_indices = @transform_1, window_bounds = array<i64: 147, 64>}, {transform_indices = @transform_2, window_bounds = array<i64: 1, 64>}, {transform_indices = @transform_3, window_bounds = array<i64: 512, 64>}]} {
    %c0 = arith.constant 0 : index
    %c0_0 = arith.constant 0 : index
    %0 = vector.load %arg3[%c0, %c0_0] : memref<512x147xbf16, #tpu.memory_space<vmem>>, vector<512x147xbf16>
    %c0_1 = arith.constant 0 : index
    %c0_2 = arith.constant 0 : index
    %1 = vector.load %arg4[%c0_1, %c0_2] : memref<147x64xbf16, #tpu.memory_space<vmem>>, vector<147x64xbf16>
    %cst = arith.constant dense<0.000000e+00> : vector<512x64xf32>
    %2 = tpu.matmul %0, %1, %cst {dimension_numbers = #tpu.dot_dimension_numbers<[1], [0], [0], [1], [0, 0, 1, 1], [], []>} : vector<512x147xbf16>, vector<147x64xbf16>, vector<512x64xf32> -> vector<512x64xf32>
    %c0_3 = arith.constant 0 : index
    %c0_4 = arith.constant 0 : index
    %3 = vector.load %arg5[%c0_3, %c0_4] : memref<1x64xf32, #tpu.memory_space<vmem>>, vector<1x64xf32>
    %4 = vector.broadcast %3 : vector<1x64xf32> to vector<512x64xf32>
    %5 = arith.addf %2, %4 : vector<512x64xf32>
    %cst_5 = arith.constant 0.000000e+00 : f32
    %6 = vector.broadcast %cst_5 : f32 to vector<512x64xf32>
    %7 = arith.cmpf ogt, %5, %6 : vector<512x64xf32>
    %cst_6 = arith.constant 1.000000e-01 : f32
    %8 = vector.broadcast %cst_6 : f32 to vector<512x64xf32>
    %9 = arith.mulf %8, %5 : vector<512x64xf32>
    %10 = arith.select %7, %5, %9 : vector<512x64xi1>, vector<512x64xf32>
    %11 = arith.truncf %10 : vector<512x64xf32> to vector<512x64xbf16>
    %c0_7 = arith.constant 0 : index
    %c0_8 = arith.constant 0 : index
    %12 = vector.load %arg6[%c0_7, %c0_8] : memref<512x64xbf16, #tpu.memory_space<vmem>>, vector<512x64xbf16>
    tpu.vector_store %arg6[%c0_7, %c0_8], %11 {strides = array<i32>} : memref<512x64xbf16, #tpu.memory_space<vmem>>, vector<512x64xbf16>,
    return
  }
  func.func @transform_0(%arg0: i32, %arg1: i32, %arg2: i32) -> (i32, i32) {
    %c0_i32 = arith.constant 0 : i32
    return %arg0, %arg2 : i32, i32
  }
  func.func @transform_1(%arg0: i32, %arg1: i32, %arg2: i32) -> (i32, i32) {
    %c0_i32 = arith.constant 0 : i32
    return %arg2, %arg1 : i32, i32
  }
  func.func @transform_2(%arg0: i32, %arg1: i32, %arg2: i32) -> (i32, i32) {
    %c0_i32 = arith.constant 0 : i32
    %c0_i32_0 = arith.constant 0 : i32
    return %c0_i32, %arg1 : i32, i32
  }
  func.func @transform_3(%arg0: i32, %arg1: i32, %arg2: i32) -> (i32, i32) {
    %c0_i32 = arith.constant 0 : i32
    return %arg0, %arg1 : i32, i32
  }
}

</mosaic_0001>

<bundles_post_ra>
// kernel: matmul_bias_act.1
= control target key start
LH: loop header
LB: loop body
LE: loop exit
PB: predicated region body
PF: predicated region fallthrough
CT: control target
= control target key end

     0   :  { %s2071_s12 = smov 0   ;;  %s2073_s13 = smov 0   ;;  %s2585_s0 = inlined_call_operand.vmem [shape: bf16[2048,147], index: 0, kind: input, shape index: {}]   ;;  %s2586_s1 = inlined_call_operand.vmem [shape: bf16[147,64], index: 1, kind: input, shape index: {}]   ;;  %s2587_s2 = inlined_call_operand.vmem [shape: f32[1,64], index: 2, kind: input, shape index: {}]   ;;  %s2588_s3 = inlined_call_operand.vmem [shape: bf16[2048,64], index: 3, kind: output, shape index: {}]  }
   0x1   :  { %s2075_s14 = smov 0  }
   0x2 LB: > { %s32_s15 = sadd.s32 1, %s2044_s13  ;;  %p1583_p0 = scmp.ge.s32.totalorder %s2048_s14, 1  ;;  %s2048_s14 = sphi %s2075_s14, %s13_s14   ;;  %s2044_s13 = sphi %s2073_s13, %s2590_s13   ;;  %s2040_s12 = sphi %s2071_s12, %s2589_s12  }
   0x3   : > { %p34_p1 = scmp.ge.s32.totalorder %s32_s15, 4  ;;  %p191_p2 = scmp.lt.s32.totalorder %s2048_s14, 5 }
   0x5   : > { %s2592_s15 = smov (%p34_p1, %s32_s15), 0  ;;  %p192_p3 = pnand %p1583_p0, %p191_p2 }
   0x6   : > { %s1584_s20 = sshll.u32 (!%p192_p3), %s2040_s12, 6 }
   0x7   : > { %195 = sbr.rel (%p192_p3) target bundleno = 434 (0x1b2), region = 32  ;;  %p236_p4 = scmp.lt.s32.totalorder (!%p192_p3), %s1584_s20, 255 }
   0xc   : > { %v1987_v0 = vld [vmem:[%s2586_s1 + $0x38] sm:$0xff]  ;;  %v350_v1 = vld [vmem:[%s2586_s1 + $0x48] sm:$0x3]  ;;  %vm797_vm0 = vcmask 1040384   ;;  %vm798_vm1 = vcmask 1041408   ;;  %v1986_v3 = vld [vmem:[%s2586_s1 + $0x30] sm:$0xff] }
   0xd   : > { %v680_v2 = vunpack.c.l.b16 %v350_v1  ;;  %804 = vmatpush.bf16.msra.mxu0 %v1987_v0  ;;  %1989 = vmatpush.bf16.msra.mxu2 %v1987_v0  ;;  %v2050_v4 = vmov 65535   ;;  %s2594_s20 = smov (!%p236_p4, %s1584_s20), 255  ;;  %v1985_v9 = vld [vmem:[%s2586_s1 + $0x28] sm:$0xff]  ;;  %v1988_v10 = vld [vmem:[%s2586_s1 + $0x40] sm:$0xff]  ;;  %vm700_vm2 = vcmask 154624   ;;  %v1983_v18 = vld [vmem:[%s2586_s1 + $0x18] sm:$0xff] }
   0xe   : > { %v799_v5 = vsel %vm797_vm0, 4294967295, %v2050_v4  ;;  %s1915_s25 = sshll.u32 %s2594_s20, 3  ;;  %v1984_v14 = vld [vmem:[%s2586_s1 + $0x20] sm:$0xff]  ;;  %v1982_v19 = vld [vmem:[%s2586_s1 + $0x10] sm:$0xff]  ;;  %v1981_v20 = vld [vmem:[%s2586_s1 + $0x8] sm:$0xff]  ;;  %s1588_s19 = sshll.u32 %s2594_s20, 2 }
   0xf   : > { %v690_v6 = vpack.c.b16 %v680_v2, %v680_v2  ;;  %v800_v7 = vsel %vm798_vm1, %v799_v5, 0  ;;  %s2110_s30 = scalar_lea.vmem %s2585_s0, %s1915_s25  ;;  %v1980_v26 = vld [vmem:[%s2586_s1] sm:$0xff]  ;;  %s2239_s23 = scalar_lea.vmem %s2588_s3, %s1588_s19  ;;  %vm1398_vm4 = vcmask 519168  }
  0x10   : > { %v1916_v11 = vld [vmem:[%s2110_s30 + $0x4] sm:$0xf]  ;;  %v1593_v12 = vld [vmem:[%s2110_s30 + $0x8] sm:$0xf0]  ;;  %v1950_v15 = vld [vmem:[%s2110_s30 + $0x114] sm:$0xf] }
  0x11   : > { %v802_v8 = vand.u32 %v800_v7, %v690_v6  ;;  %805 = vmatpush.bf16.msra.mxu0 %v1986_v3  ;;  %1990 = vmatpush.bf16.msra.mxu2 %v1986_v3  ;;  %v1596_v13 = vor.u32 %v1916_v11, %v1593_v12  ;;  %v1729_v16 = vld [vmem:[%s2110_s30 + $0x118] sm:$0xf0]  ;;  %v1918_v21 = vld [vmem:[%s2110_s30 + $0x14] sm:$0xf]  ;;  %v1952_v23 = vld [vmem:[%s2110_s30 + $0x124] sm:$0xf] }
  0x12   : > { %v1732_v17 = vor.u32 %v1950_v15, %v1729_v16  ;;  %v1601_v22 = vld [vmem:[%s2110_s30 + $0x18] sm:$0xf0]  ;;  %v1737_v24 = vld [vmem:[%s2110_s30 + $0x128] sm:$0xf0]  ;;  %v1591_v27 = vld [vmem:[%s2110_s30] sm:$0xf] }
  0x13   : > { %979 = vmatpush.bf16.msra.mxu1 %v802_v8  ;;  %1997 = vmatpush.bf16.msra.mxu3 %v802_v8  ;;  %v1604_v25 = vor.u32 %v1918_v21, %v1601_v22  ;;  %v1917_v28 = vld [vmem:[%s2110_s30 + $0x4] sm:$0xf0]  ;;  %v1719_v29 = vld [vmem:[%s2110_s30 + $0x100] sm:$0xf]  ;;  %v1740_v31 = vor.u32 %v1952_v23, %v1737_v24  ;;  %v1920_v34 = vld [vmem:[%s2110_s30 + $0x24] sm:$0xf] }
  0x14   : > { %v1949_v30 = vld [vmem:[%s2110_s30 + $0x104] sm:$0xf0]  ;;  %v1592_v32 = vor.u32 %v1917_v28, %v1591_v27  ;;  %v1609_v35 = vld [vmem:[%s2110_s30 + $0x28] sm:$0xf0]  ;;  %v1954_v36 = vld [vmem:[%s2110_s30 + $0x134] sm:$0xf] }
  0x15   : > { %806 = vmatpush.bf16.msra.mxu0 %v1985_v9  ;;  %1991 = vmatpush.bf16.msra.mxu2 %v1985_v9  ;;  %v1720_v33 = vor.u32 %v1949_v30, %v1719_v29  ;;  %v1745_v37 = vld [vmem:[%s2110_s30 + $0x138] sm:$0xf0]  ;;  %v1612_v38 = vor.u32 %v1920_v34, %v1609_v35  ;;  %v1599_v39 = vld [vmem:[%s2110_s30 + $0x10] sm:$0xf]  ;;  %v1919_v40 = vld [vmem:[%s2110_s30 + $0x14] sm:$0xf0] }
  0x16   : > { %v1727_v41 = vld [vmem:[%s2110_s30 + $0x110] sm:$0xf]  ;;  %v1951_v42 = vld [vmem:[%s2110_s30 + $0x114] sm:$0xf0]  ;;  %v1748_v43 = vor.u32 %v1954_v36, %v1745_v37  ;;  %v1600_v44 = vor.u32 %v1919_v40, %v1599_v39  ;;  %v1922_v46 = vld [vmem:[%s2110_s30 + $0x34] sm:$0xf] }
  0x17   : > { %980 = vmatpush.bf16.msra.mxu1 %v1988_v10  ;;  %1998 = vmatpush.bf16.msra.mxu3 %v1988_v10  ;;  %v1728_v45 = vor.u32 %v1951_v42, %v1727_v41  ;;  %v1617_v47 = vld [vmem:[%s2110_s30 + $0x38] sm:$0xf0]  ;;  %v1956_v48 = vld [vmem:[%s2110_s30 + $0x144] sm:$0xf]  ;;  %v1753_v49 = vld [vmem:[%s2110_s30 + $0x148] sm:$0xf0] }
  0x18   : > { %v1620_v50 = vor.u32 %v1922_v46, %v1617_v47  ;;  %v1607_v51 = vld [vmem:[%s2110_s30 + $0x20] sm:$0xf]  ;;  %v1921_v52 = vld [vmem:[%s2110_s30 + $0x24] sm:$0xf0]  ;;  %v1756_v55 = vor.u32 %v1956_v48, %v1753_v49  ;;  %v1924_v58 = vld [vmem:[%s2110_s30 + $0x44] sm:$0xf] }
  0x19   : > { %807 = vmatpush.bf16.msra.mxu0 %v1984_v14  ;;  %1992 = vmatpush.bf16.msra.mxu2 %v1984_v14  ;;  %v1735_v53 = vld [vmem:[%s2110_s30 + $0x120] sm:$0xf]  ;;  %v1953_v54 = vld [vmem:[%s2110_s30 + $0x124] sm:$0xf0]  ;;  %v1608_v56 = vor.u32 %v1921_v52, %v1607_v51  ;;  %v1625_v59 = vld [vmem:[%s2110_s30 + $0x48] sm:$0xf0] }
  0x1a   : > { %1881 = vmatmul.msk.bf16.vlgmr.msra.gmra.mxu1 %vm700_vm2, %v1596_v13  ;;  %1898 = vmatmul.msk.bf16.vlgmr.msra.gmra.mxu3 %vm700_vm2, %v1732_v17  ;;  %v1736_v57 = vor.u32 %v1953_v54, %v1735_v53  ;;  %v1958_v60 = vld [vmem:[%s2110_s30 + $0x154] sm:$0xf]  ;;  %v1761_v61 = vld [vmem:[%s2110_s30 + $0x158] sm:$0xf0]  ;;  %v1628_v62 = vor.u32 %v1924_v58, %v1625_v59  ;;  %v1615_v63 = vld [vmem:[%s2110_s30 + $0x30] sm:$0xf] }
  0x1b   : > { %v1923_v0 = vld [vmem:[%s2110_s30 + $0x34] sm:$0xf0]  ;;  %v1743_v1 = vld [vmem:[%s2110_s30 + $0x130] sm:$0xf]  ;;  %v1764_v3 = vor.u32 %v1958_v60, %v1761_v61  ;;  %v1926_v6 = vld [vmem:[%s2110_s30 + $0x54] sm:$0xf] }
  0x1c   : > { %v1955_v2 = vld [vmem:[%s2110_s30 + $0x134] sm:$0xf0]  ;;  %v1616_v4 = vor.u32 %v1923_v0, %v1615_v63  ;;  %v1633_v7 = vld [vmem:[%s2110_s30 + $0x58] sm:$0xf0]  ;;  %v1960_v8 = vld [vmem:[%s2110_s30 + $0x164] sm:$0xf] }
  0x1d   : > { %808 = vmatpush.bf16.msra.mxu0 %v1983_v18  ;;  %1993 = vmatpush.bf16.msra.mxu2 %v1983_v18  ;;  %v1744_v5 = vor.u32 %v1955_v2, %v1743_v1  ;;  %v1769_v9 = vld [vmem:[%s2110_s30 + $0x168] sm:$0xf0]  ;;  %v1636_v10 = vor.u32 %v1926_v6, %v1633_v7  ;;  %v1623_v11 = vld [vmem:[%s2110_s30 + $0x40] sm:$0xf]  ;;  %v1925_v12 = vld [vmem:[%s2110_s30 + $0x44] sm:$0xf0] }
  0x1e   : > { %v1751_v13 = vld [vmem:[%s2110_s30 + $0x140] sm:$0xf]  ;;  %v1957_v14 = vld [vmem:[%s2110_s30 + $0x144] sm:$0xf0]  ;;  %v1772_v15 = vor.u32 %v1960_v8, %v1769_v9  ;;  %v1624_v16 = vor.u32 %v1925_v12, %v1623_v11  ;;  %v1928_v18 = vld [vmem:[%s2110_s30 + $0x64] sm:$0xf] }
  0x1f   : > { %v1752_v17 = vor.u32 %v1957_v14, %v1751_v13  ;;  %v1777_v21 = vld [vmem:[%s2110_s30 + $0x178] sm:$0xf0]  ;;  %v1631_v23 = vld [vmem:[%s2110_s30 + $0x50] sm:$0xf]  ;;  %v1927_v24 = vld [vmem:[%s2110_s30 + $0x54] sm:$0xf0] }
  0x20   : > { %v1632_v28 = vor.u32 %v1927_v24, %v1631_v23  ;;  %v1930_v30 = vld [vmem:[%s2110_s30 + $0x74] sm:$0xf]  ;;  %v1639_v35 = vld [vmem:[%s2110_s30 + $0x60] sm:$0xf]  ;;  %v1929_v36 = vld [vmem:[%s2110_s30 + $0x64] sm:$0xf0] }
  0x21   : > { %809 = vmatpush.bf16.msra.mxu0 %v1982_v19  ;;  %1994 = vmatpush.bf16.msra.mxu2 %v1982_v19  ;;  %v1641_v19 = vld [vmem:[%s2110_s30 + $0x68] sm:$0xf0]  ;;  %v1767_v37 = vld [vmem:[%s2110_s30 + $0x160] sm:$0xf]  ;;  %v1640_v40 = vor.u32 %v1929_v36, %v1639_v35  ;;  %v1932_v42 = vld [vmem:[%s2110_s30 + $0x84] sm:$0xf] }
  0x22   : > { %v1644_v22 = vor.u32 %v1928_v18, %v1641_v19  ;;  %v1647_v47 = vld [vmem:[%s2110_s30 + $0x70] sm:$0xf]  ;;  %v1931_v48 = vld [vmem:[%s2110_s30 + $0x74] sm:$0xf0]  ;;  %v1665_v58 = vld [vmem:[%s2110_s30 + $0x98] sm:$0xf0] }
  0x23   : > { %v1963_v51 = vld [vmem:[%s2110_s30 + $0x174] sm:$0xf0]  ;;  %v1648_v53 = vor.u32 %v1931_v48, %v1647_v47  ;;  %v1968_v59 = vld [vmem:[%s2110_s30 + $0x1a4] sm:$0xf]  ;;  %v1801_v60 = vld [vmem:[%s2110_s30 + $0x1a8] sm:$0xf0] }
  0x24   : > { %v1933_v63 = vld [vmem:[%s2110_s30 + $0x84] sm:$0xf0]  ;;  %v2226_v2 = vld [vmem:[%s2587_s2] ss:$0 sm:$0xff]  ;;  %v1936_v19 = vld [vmem:[%s2110_s30 + $0xa4] sm:$0xf] }
  0x25   : > { %810 = vmatpush.bf16.msra.mxu0 %v1981_v20  ;;  %1995 = vmatpush.bf16.msra.mxu2 %v1981_v20  ;;  %v1962_v20 = vld [vmem:[%s2110_s30 + $0x174] sm:$0xf]  ;;  %v1809_v23 = vld [vmem:[%s2110_s30 + $0x1b8] sm:$0xf0] }
  0x26   : > { %v1780_v27 = vor.u32 %v1962_v20, %v1777_v21  ;;  %v1673_v20 = vld [vmem:[%s2110_s30 + $0xa8] sm:$0xf0] }
  0x27   : > { %v1676_v24 = vor.u32 %v1936_v19, %v1673_v20 }
  0x29   : > { %811 = vmatpush.bf16.msra.mxu0 %v1980_v26  ;;  %1996 = vmatpush.bf16.msra.mxu2 %v1980_v26  ;;  %v1959_v26 = vld [vmem:[%s2110_s30 + $0x154] sm:$0xf0] }
  0x2a   : > { %1882 = vmatmul.msk.bf16.gmra.mxu1 %vm700_vm2, %v1604_v25  ;;  %1899 = vmatmul.msk.bf16.gmra.mxu3 %vm700_vm2, %v1740_v31  ;;  %v1759_v25 = vld [vmem:[%s2110_s30 + $0x150] sm:$0xf]  ;;  %v1649_v31 = vld [vmem:[%s2110_s30 + $0x78] sm:$0xf0] }
  0x2b   : > { %v1760_v29 = vor.u32 %v1959_v26, %v1759_v25  ;;  %v1652_v34 = vor.u32 %v1930_v30, %v1649_v31  ;;  %v1663_v25 = vld [vmem:[%s2110_s30 + $0x90] sm:$0xf]  ;;  %v1935_v26 = vld [vmem:[%s2110_s30 + $0x94] sm:$0xf0] }
  0x2c   : > { %812 = vmatmul.bf16.vlgmr.msra.gmra.mxu0 %v1592_v32  ;;  %892 = vmatmul.bf16.vlgmr.msra.gmra.mxu2 %v1720_v33  ;;  %v1964_v32 = vld [vmem:[%s2110_s30 + $0x184] sm:$0xf]  ;;  %v1785_v33 = vld [vmem:[%s2110_s30 + $0x188] sm:$0xf0]  ;;  %v1967_v31 = vld [vmem:[%s2110_s30 + $0x194] sm:$0xf0]  ;;  %v1664_v35 = vor.u32 %v1935_v26, %v1663_v25 }
  0x2d   : > { %v1788_v39 = vor.u32 %v1964_v32, %v1785_v33 }
  0x3a   : > { %1883 = vmatmul.msk.bf16.gmra.mxu1 %vm700_vm2, %v1612_v38  ;;  %1900 = vmatmul.msk.bf16.gmra.mxu3 %vm700_vm2, %v1748_v43  ;;  %v1961_v38 = vld [vmem:[%s2110_s30 + $0x164] sm:$0xf0]  ;;  %v1657_v43 = vld [vmem:[%s2110_s30 + $0x88] sm:$0xf0] }
  0x3b   : > { %v1768_v41 = vor.u32 %v1961_v38, %v1767_v37  ;;  %v1660_v46 = vor.u32 %v1932_v42, %v1657_v43 }
  0x3c   : > { %817 = vmatmul.bf16.gmra.mxu0 %v1600_v44  ;;  %897 = vmatmul.bf16.gmra.mxu2 %v1728_v45  ;;  %v1966_v44 = vld [vmem:[%s2110_s30 + $0x194] sm:$0xf]  ;;  %v1793_v45 = vld [vmem:[%s2110_s30 + $0x198] sm:$0xf0] }
  0x3d   : > { %v1796_v52 = vor.u32 %v1966_v44, %v1793_v45 }
  0x4a   : > { %1884 = vmatmul.msk.bf16.gmra.mxu1 %vm700_vm2, %v1620_v50  ;;  %1901 = vmatmul.msk.bf16.gmra.mxu3 %vm700_vm2, %v1756_v55  ;;  %v1775_v50 = vld [vmem:[%s2110_s30 + $0x170] sm:$0xf] }
  0x4b   : > { %v1776_v54 = vor.u32 %v1963_v51, %v1775_v50  ;;  %v1938_v50 = vld [vmem:[%s2110_s30 + $0xb4] sm:$0xf]  ;;  %v1681_v51 = vld [vmem:[%s2110_s30 + $0xb8] sm:$0xf0] }
  0x4c   : > { %822 = vmatmul.bf16.gmra.mxu0 %v1608_v56  ;;  %902 = vmatmul.bf16.gmra.mxu2 %v1736_v57  ;;  %v1934_v57 = vld [vmem:[%s2110_s30 + $0x94] sm:$0xf] }
  0x4d   : > { %v1668_v61 = vor.u32 %v1934_v57, %v1665_v58  ;;  %v1972_v57 = vld [vmem:[%s2110_s30 + $0x1c4] sm:$0xf]  ;;  %v1817_v58 = vld [vmem:[%s2110_s30 + $0x1c8] sm:$0xf0] }
  0x5a   : > { %1885 = vmatmul.msk.bf16.gmra.mxu1 %vm700_vm2, %v1628_v62  ;;  %1902 = vmatmul.msk.bf16.gmra.mxu3 %vm700_vm2, %v1764_v3  ;;  %v1655_v62 = vld [vmem:[%s2110_s30 + $0x80] sm:$0xf] }
  0x5b   : > { %v1783_v3 = vld [vmem:[%s2110_s30 + $0x180] sm:$0xf]  ;;  %v1656_v6 = vor.u32 %v1933_v63, %v1655_v62 }
  0x5c   : > { %827 = vmatmul.bf16.gmra.mxu0 %v1616_v4  ;;  %907 = vmatmul.bf16.gmra.mxu2 %v1744_v5  ;;  %v1965_v4 = vld [vmem:[%s2110_s30 + $0x184] sm:$0xf0]  ;;  %v1804_v5 = vor.u32 %v1968_v59, %v1801_v60  ;;  %v1684_v60 = vor.u32 %v1938_v50, %v1681_v51 }
  0x5d   : > { %v1784_v8 = vor.u32 %v1965_v4, %v1783_v3  ;;  %v1969_v3 = vld [vmem:[%s2110_s30 + $0x1a4] sm:$0xf0]  ;;  %v1820_v4 = vor.u32 %v1972_v57, %v1817_v58 }
  0x6a   : > { %1886 = vmatmul.msk.bf16.gmra.mxu1 %vm700_vm2, %v1636_v10  ;;  %1903 = vmatmul.msk.bf16.gmra.mxu3 %vm700_vm2, %v1772_v15 }
  0x6c   : > { %832 = vmatmul.bf16.gmra.mxu0 %v1624_v16  ;;  %912 = vmatmul.bf16.gmra.mxu2 %v1752_v17 }
  0x7a   : > { %1887 = vmatmul.msk.bf16.gmra.mxu1 %vm700_vm2, %v1644_v22  ;;  %1904 = vmatmul.msk.bf16.gmra.mxu3 %vm700_vm2, %v1780_v27  ;;  %v1970_v22 = vld [vmem:[%s2110_s30 + $0x1b4] sm:$0xf]  ;;  %v1791_v27 = vld [vmem:[%s2110_s30 + $0x190] sm:$0xf] }
  0x7b   : > { %v1812_v32 = vor.u32 %v1970_v22, %v1809_v23  ;;  %v1792_v38 = vor.u32 %v1967_v31, %v1791_v27  ;;  %v1689_v31 = vld [vmem:[%s2110_s30 + $0xc8] sm:$0xf0] }
  0x7c   : > { %837 = vmatmul.bf16.gmra.mxu0 %v1632_v28  ;;  %917 = vmatmul.bf16.gmra.mxu2 %v1760_v29 }
  0x8a   : > { %1888 = vmatmul.msk.bf16.gmra.mxu1 %vm700_vm2, %v1652_v34  ;;  %1905 = vmatmul.msk.bf16.gmra.mxu3 %vm700_vm2, %v1788_v39 }
  0x8c   : > { %842 = vmatmul.bf16.gmra.mxu0 %v1640_v40  ;;  %922 = vmatmul.bf16.gmra.mxu2 %v1768_v41 }
  0x97   : > { %v982_v49 = vpop.f32.mrf.mxu1 }
  0x9a   : > { %1889 = vmatmul.msk.bf16.gmra.mxu1 %vm700_vm2, %v1660_v46  ;;  %1906 = vmatmul.msk.bf16.gmra.mxu3 %vm700_vm2, %v1796_v52 }
  0x9c   : > { %847 = vmatmul.bf16.gmra.mxu0 %v1648_v53  ;;  %927 = vmatmul.bf16.gmra.mxu2 %v1776_v54  ;;  %v1671_v53 = vld [vmem:[%s2110_s30 + $0xa0] sm:$0xf] }
  0x9d   : > { %v2213_v55 = vpop.f32.mrf.mxu3 }
  0x9f   : > { %v984_v56 = vpop.f32.mrf.mxu1 }
  0xa5   : > { %v2221_v0 = vpop.f32.mrf.mxu3 }
  0xa7   : > { %v987_v1 = vpop.f32.mrf.mxu1 }
  0xa9   : > { %v813_v7 = vpop.f32.mrf.mxu0 }
  0xaa   : > { %1890 = vmatmul.msk.bf16.gmra.mxu1 %vm700_vm2, %v1668_v61  ;;  %v814_v9 = vadd.f32 %v2226_v2, %v813_v7  ;;  %1907 = vmatmul.msk.bf16.gmra.mxu3 %vm700_vm2, %v1804_v5  ;;  %v1799_v61 = vld [vmem:[%s2110_s30 + $0x1a0] sm:$0xf] }
  0xac   : > { %v983_v10 = vadd.f32 %v982_v49, %v814_v9  ;;  %852 = vmatmul.bf16.gmra.mxu0 %v1656_v6  ;;  %932 = vmatmul.bf16.gmra.mxu2 %v1784_v8 }
  0xad   : > { %v2234_v11 = vpop.f32.mrf.mxu3 }
  0xae   : > { %vm1142_vm3 = vcmp.gt.f32.partialorder %v983_v10, 0.0  ;;  %v1206_v12 = vmul.f32 0.1, %v983_v10 }
  0xaf   : > { %v989_v13 = vpop.f32.mrf.mxu1  ;;  %v2241_v15 = vpop.f32.mrf.mxu2 }
  0xb0   : > { %v1270_v14 = vsel %vm1142_vm3, %v983_v10, %v1206_v12 }
  0xb1   : > { %v1334_v16 = vpack.c.bf16 %v1270_v14, %v1270_v14  ;;  %v815_v17 = vpop.f32.mrf.mxu0 }
  0xb2   : > { %v816_v18 = vadd.f32 %v2226_v2, %v815_v17 }
  0xb3   : > { %1399 = vst.msk [vmem:[%s2239_s23] sm:$0xf] %vm1398_vm4, %v1334_v16 }
  0xb4   : > { %v985_v21 = vadd.f32 %v984_v56, %v816_v18  ;;  %v1937_v56 = vld [vmem:[%s2110_s30 + $0xa4] sm:$0xf0] }
  0xb5   : > { %v2253_v28 = vpop.f32.mrf.mxu3  ;;  %v1672_v8 = vor.u32 %v1937_v56, %v1671_v53 }
  0xb6   : > { %vm1143_vm5 = vcmp.gt.f32.partialorder %v985_v21, 0.0  ;;  %v1207_v29 = vmul.f32 0.1, %v985_v21 }
  0xb7   : > { %v992_v30 = vpop.f32.mrf.mxu1  ;;  %v2256_v34 = vpop.f32.mrf.mxu2 }
  0xb8   : > { %v1271_v33 = vsel %vm1143_vm5, %v985_v21, %v1207_v29 }
  0xb9   : > { %v1335_v36 = vpack.c.bf16 %v1271_v33, %v1271_v33  ;;  %v818_v37 = vpop.f32.mrf.mxu0  ;;  %v1679_v33 = vld [vmem:[%s2110_s30 + $0xb0] sm:$0xf] }
  0xba   : > { %1891 = vmatmul.msk.bf16.gmra.mxu1 %vm700_vm2, %v1676_v24  ;;  %v819_v39 = vadd.f32 %v2226_v2, %v818_v37  ;;  %1908 = vmatmul.msk.bf16.gmra.mxu3 %vm700_vm2, %v1812_v32  ;;  %v1974_v37 = vld [vmem:[%s2110_s30 + $0x1d4] sm:$0xf] }
  0xbb   : > { %1400 = vst.msk [vmem:[%s2239_s23 + $0x4] sm:$0xf] %vm1398_vm4, %v1335_v36  ;;  %v1939_v36 = vld [vmem:[%s2110_s30 + $0xb4] sm:$0xf0] }
  0xbc   : > { %v988_v40 = vadd.f32 %v987_v1, %v819_v39  ;;  %857 = vmatmul.bf16.gmra.mxu0 %v1664_v35  ;;  %937 = vmatmul.bf16.gmra.mxu2 %v1792_v38  ;;  %v1825_v38 = vld [vmem:[%s2110_s30 + $0x1d8] sm:$0xf0]  ;;  %v1680_v51 = vor.u32 %v1939_v36, %v1679_v33 }
  0xbd   : > { %v2263_v41 = vpop.f32.mrf.mxu3 }
  0xbe   : > { %vm1144_vm6 = vcmp.gt.f32.partialorder %v988_v40, 0.0  ;;  %v1208_v42 = vmul.f32 0.1, %v988_v40 }
  0xbf   : > { %v2265_v43 = vpop.f32.mrf.mxu1  ;;  %v898_v45 = vpop.f32.mrf.mxu2 }
  0xc0   : > { %v1272_v44 = vsel %vm1144_vm6, %v988_v40, %v1208_v42  ;;  %v899_v47 = vadd.f32 %v2226_v2, %v898_v45  ;;  %v1807_v42 = vld [vmem:[%s2110_s30 + $0x1b0] sm:$0xf] }
  0xc1   : > { %v1336_v46 = vpack.c.bf16 %v1272_v44, %v1272_v44  ;;  %v820_v48 = vpop.f32.mrf.mxu0 }
  0xc2   : > { %v821_v49 = vadd.f32 %v2226_v2, %v820_v48  ;;  %v1068_v52 = vadd.f32 %v2213_v55, %v899_v47  ;;  %v1971_v47 = vld [vmem:[%s2110_s30 + $0x1b4] sm:$0xf0] }
  0xc3   : > { %1401 = vst.msk [vmem:[%s2239_s23 + $0x8] sm:$0xf] %vm1398_vm4, %v1336_v46  ;;  %v1808_v56 = vor.u32 %v1971_v47, %v1807_v42 }
  0xc4   : > { %v990_v54 = vadd.f32 %v989_v13, %v821_v49  ;;  %vm1176_vm7 = vcmp.gt.f32.partialorder %v1068_v52, 0.0  ;;  %v1240_v59 = vmul.f32 0.1, %v1068_v52  ;;  %v1800_v13 = vor.u32 %v1969_v3, %v1799_v61 }
  0xc5   : > { %v2279_v62 = vpop.f32.mrf.mxu3 }
  0xc6   : > { %vm1145_vm8 = vcmp.gt.f32.partialorder %v990_v54, 0.0  ;;  %v1209_v63 = vmul.f32 0.1, %v990_v54  ;;  %v1304_v55 = vsel %vm1176_vm7, %v1068_v52, %v1240_v59 }
  0xc7   : > { %v2281_v1 = vpop.f32.mrf.mxu1  ;;  %v1368_v5 = vpack.c.bf16 %v1304_v55, %v1304_v55  ;;  %v900_v7 = vpop.f32.mrf.mxu2 }
  0xc8   : > { %v1273_v6 = vsel %vm1145_vm8, %v990_v54, %v1209_v63  ;;  %v901_v10 = vadd.f32 %v2226_v2, %v900_v7 }
  0xc9   : > { %v1337_v9 = vpack.c.bf16 %v1273_v6, %v1273_v6  ;;  %v823_v12 = vpop.f32.mrf.mxu0  ;;  %1433 = vst.msk [vmem:[%s2239_s23 + $0x88] sm:$0xf] %vm1398_vm4, %v1368_v5 }
  0xca   : > { %1892 = vmatmul.msk.bf16.gmra.mxu1 %vm700_vm2, %v1684_v60  ;;  %v824_v14 = vadd.f32 %v2226_v2, %v823_v12  ;;  %1909 = vmatmul.msk.bf16.gmra.mxu3 %vm700_vm2, %v1820_v4  ;;  %v1070_v16 = vadd.f32 %v2221_v0, %v901_v10  ;;  %v1697_v10 = vld [vmem:[%s2110_s30 + $0xd8] sm:$0xf0] }
  0xcb   : > { %1402 = vst.msk [vmem:[%s2239_s23 + $0xc] sm:$0xf] %vm1398_vm4, %v1337_v9  ;;  %v1942_v9 = vld [vmem:[%s2110_s30 + $0xd4] sm:$0xf] }
  0xcc   : > { %v993_v17 = vadd.f32 %v992_v30, %v824_v14  ;;  %862 = vmatmul.bf16.gmra.mxu0 %v1672_v8  ;;  %vm1177_vm9 = vcmp.gt.f32.partialorder %v1070_v16, 0.0  ;;  %v1241_v18 = vmul.f32 0.1, %v1070_v16  ;;  %942 = vmatmul.bf16.gmra.mxu2 %v1800_v13  ;;  %v1940_v30 = vld [vmem:[%s2110_s30 + $0xc4] sm:$0xf] }
  0xcd   : > { %v2293_v19 = vpop.f32.mrf.mxu3  ;;  %v1692_v40 = vor.u32 %v1940_v30, %v1689_v31  ;;  %v1687_v13 = vld [vmem:[%s2110_s30 + $0xc0] sm:$0xf] }
  0xce   : > { %vm1146_vm10 = vcmp.gt.f32.partialorder %v993_v17, 0.0  ;;  %v1210_v20 = vmul.f32 0.1, %v993_v17  ;;  %v1305_v22 = vsel %vm1177_vm9, %v1070_v16, %v1241_v18  ;;  %v1941_v16 = vld [vmem:[%s2110_s30 + $0xc4] sm:$0xf0] }
  0xcf   : > { %v2295_v21 = vpop.f32.mrf.mxu1  ;;  %v1369_v0 = vpack.c.bf16 %v1305_v22, %v1305_v22  ;;  %v903_v24 = vpop.f32.mrf.mxu2  ;;  %v1833_v18 = vld [vmem:[%s2110_s30 + $0x1e8] sm:$0xf0]  ;;  %v1700_v22 = vor.u32 %v1942_v9, %v1697_v10  ;;  %v1688_v31 = vor.u32 %v1941_v16, %v1687_v13 }
  0xd0   : > { %v1274_v23 = vsel %vm1146_vm10, %v993_v17, %v1210_v20  ;;  %v904_v26 = vadd.f32 %v2226_v2, %v903_v24  ;;  %v1976_v17 = vld [vmem:[%s2110_s30 + $0x1e4] sm:$0xf] }
  0xd1   : > { %v1338_v25 = vpack.c.bf16 %v1274_v23, %v1274_v23  ;;  %v825_v27 = vpop.f32.mrf.mxu0  ;;  %1434 = vst.msk [vmem:[%s2239_s23 + $0x8c] sm:$0xf] %vm1398_vm4, %v1369_v0  ;;  %v1815_v0 = vld [vmem:[%s2110_s30 + $0x1c0] sm:$0xf] }
  0xd2   : > { %v826_v29 = vadd.f32 %v2226_v2, %v825_v27  ;;  %v1073_v32 = vadd.f32 %v2234_v11, %v904_v26  ;;  %v1828_v11 = vor.u32 %v1974_v37, %v1825_v38  ;;  %v1973_v26 = vld [vmem:[%s2110_s30 + $0x1c4] sm:$0xf0] }
  0xd3   : > { %1403 = vst.msk [vmem:[%s2239_s23 + $0x10] sm:$0xf] %vm1398_vm4, %v1338_v25  ;;  %v1816_v36 = vor.u32 %v1973_v26, %v1815_v0 }
  0xd4   : > { %v995_v35 = vadd.f32 %v2265_v43, %v826_v29  ;;  %vm1178_vm11 = vcmp.gt.f32.partialorder %v1073_v32, 0.0  ;;  %v1242_v39 = vmul.f32 0.1, %v1073_v32 }
  0xd5   : > { %v2312_v44 = vpop.f32.mrf.mxu3 }
  0xd6   : > { %vm1147_vm12 = vcmp.gt.f32.partialorder %v995_v35, 0.0  ;;  %v1211_v45 = vmul.f32 0.1, %v995_v35  ;;  %v1306_v48 = vsel %vm1178_vm11, %v1073_v32, %v1242_v39 }
  0xd7   : > { %v2314_v46 = vpop.f32.mrf.mxu1  ;;  %v1370_v49 = vpack.c.bf16 %v1306_v48, %v1306_v48  ;;  %v905_v50 = vpop.f32.mrf.mxu2 }
  0xd8   : > { %v1275_v43 = vsel %vm1147_vm12, %v995_v35, %v1211_v45  ;;  %v906_v53 = vadd.f32 %v2226_v2, %v905_v50 }
  0xd9   : > { %v1339_v52 = vpack.c.bf16 %v1275_v43, %v1275_v43  ;;  %v828_v54 = vpop.f32.mrf.mxu0  ;;  %1435 = vst.msk [vmem:[%s2239_s23 + $0x90] sm:$0xf] %vm1398_vm4, %v1370_v49 }
  0xda   : > { %1893 = vmatmul.msk.bf16.gmra.mxu1 %vm700_vm2, %v1692_v40  ;;  %v829_v57 = vadd.f32 %v2226_v2, %v828_v54  ;;  %1910 = vmatmul.msk.bf16.gmra.mxu3 %vm700_vm2, %v1828_v11  ;;  %v1075_v58 = vadd.f32 %v2253_v28, %v906_v53  ;;  %v1705_v53 = vld [vmem:[%s2110_s30 + $0xe8] sm:$0xf0] }
  0xdb   : > { %1404 = vst.msk [vmem:[%s2239_s23 + $0x14] sm:$0xf] %vm1398_vm4, %v1339_v52  ;;  %v1944_v52 = vld [vmem:[%s2110_s30 + $0xe4] sm:$0xf] }
  0xdc   : > { %v998_v59 = vadd.f32 %v2281_v1, %v829_v57  ;;  %867 = vmatmul.bf16.gmra.mxu0 %v1680_v51  ;;  %vm1179_vm13 = vcmp.gt.f32.partialorder %v1075_v58, 0.0  ;;  %v1243_v60 = vmul.f32 0.1, %v1075_v58  ;;  %947 = vmatmul.bf16.gmra.mxu2 %v1808_v56  ;;  %v1695_v56 = vld [vmem:[%s2110_s30 + $0xd0] sm:$0xf] }
  0xdd   : > { %v2327_v61 = vpop.f32.mrf.mxu3 }
  0xde   : > { %vm1148_vm14 = vcmp.gt.f32.partialorder %v998_v59, 0.0  ;;  %v1212_v63 = vmul.f32 0.1, %v998_v59  ;;  %v1307_v4 = vsel %vm1179_vm13, %v1075_v58, %v1243_v60  ;;  %v1943_v58 = vld [vmem:[%s2110_s30 + $0xd4] sm:$0xf0] }
  0xdf   : > { %v2329_v3 = vpop.f32.mrf.mxu1  ;;  %v1371_v28 = vpack.c.bf16 %v1307_v4, %v1307_v4  ;;  %v908_v55 = vpop.f32.mrf.mxu2  ;;  %v1841_v60 = vld [vmem:[%s2110_s30 + $0x1f8] sm:$0xf0]  ;;  %v1708_v4 = vor.u32 %v1944_v52, %v1705_v53  ;;  %v1696_v10 = vor.u32 %v1943_v58, %v1695_v56 }
  0xe0   : > { %v1276_v1 = vsel %vm1148_vm14, %v998_v59, %v1212_v63  ;;  %v909_v6 = vadd.f32 %v2226_v2, %v908_v55  ;;  %v1978_v59 = vld [vmem:[%s2110_s30 + $0x1f4] sm:$0xf] }
  0xe1   : > { %v1340_v5 = vpack.c.bf16 %v1276_v1, %v1276_v1  ;;  %v830_v7 = vpop.f32.mrf.mxu0  ;;  %1436 = vst.msk [vmem:[%s2239_s23 + $0x94] sm:$0xf] %vm1398_vm4, %v1371_v28  ;;  %v1823_v28 = vld [vmem:[%s2110_s30 + $0x1d0] sm:$0xf] }
  0xe2   : > { %v831_v8 = vadd.f32 %v2226_v2, %v830_v7  ;;  %v1078_v12 = vadd.f32 %v2263_v41, %v909_v6  ;;  %v1836_v41 = vor.u32 %v1976_v17, %v1833_v18 }
  0xe3   : > { %1405 = vst.msk [vmem:[%s2239_s23 + $0x18] sm:$0xf] %vm1398_vm4, %v1340_v5  ;;  %v1975_v5 = vld [vmem:[%s2110_s30 + $0x1d4] sm:$0xf0] }
  0xe4   : > { %v1000_v14 = vadd.f32 %v2295_v21, %v831_v8  ;;  %vm1180_vm15 = vcmp.gt.f32.partialorder %v1078_v12, 0.0  ;;  %v1244_v20 = vmul.f32 0.1, %v1078_v12  ;;  %v1824_v16 = vor.u32 %v1975_v5, %v1823_v28 }
  0xe5   : > { %v2346_v23 = vpop.f32.mrf.mxu3 }
  0xe6   : > { %vm1149_vm0 = vcmp.gt.f32.partialorder %v1000_v14, 0.0  ;;  %v1213_v24 = vmul.f32 0.1, %v1000_v14  ;;  %v1308_v27 = vsel %vm1180_vm15, %v1078_v12, %v1244_v20 }
  0xe7   : > { %v2348_v25 = vpop.f32.mrf.mxu1  ;;  %v1372_v29 = vpack.c.bf16 %v1308_v27, %v1308_v27  ;;  %v910_v30 = vpop.f32.mrf.mxu2 }
  0xe8   : > { %v1277_v21 = vsel %vm1149_vm0, %v1000_v14, %v1213_v24  ;;  %v911_v33 = vadd.f32 %v2226_v2, %v910_v30 }
  0xe9   : > { %v1341_v32 = vpack.c.bf16 %v1277_v21, %v1277_v21  ;;  %v833_v35 = vpop.f32.mrf.mxu0  ;;  %1437 = vst.msk [vmem:[%s2239_s23 + $0x98] sm:$0xf] %vm1398_vm4, %v1372_v29 }
  0xea   : > { %1894 = vmatmul.msk.bf16.gmra.mxu1 %vm700_vm2, %v1700_v22  ;;  %v834_v37 = vadd.f32 %v2226_v2, %v833_v35  ;;  %1911 = vmatmul.msk.bf16.gmra.mxu3 %vm700_vm2, %v1836_v41  ;;  %v1080_v38 = vadd.f32 %v2279_v62, %v911_v33  ;;  %v1713_v33 = vld [vmem:[%s2110_s30 + $0xf8] sm:$0xf0] }
  0xeb   : > { %1406 = vst.msk [vmem:[%s2239_s23 + $0x1c] sm:$0xf] %vm1398_vm4, %v1341_v32  ;;  %v1946_v32 = vld [vmem:[%s2110_s30 + $0xf4] sm:$0xf] }
  0xec   : > { %v1003_v39 = vadd.f32 %v2314_v46, %v834_v37  ;;  %872 = vmatmul.bf16.gmra.mxu0 %v1688_v31  ;;  %vm1181_vm1 = vcmp.gt.f32.partialorder %v1080_v38, 0.0  ;;  %v1245_v40 = vmul.f32 0.1, %v1080_v38  ;;  %952 = vmatmul.bf16.gmra.mxu2 %v1816_v36  ;;  %v1703_v37 = vld [vmem:[%s2110_s30 + $0xe0] sm:$0xf] }
  0xed   : > { %v2361_v42 = vpop.f32.mrf.mxu3 }
  0xee   : > { %vm1150_vm3 = vcmp.gt.f32.partialorder %v1003_v39, 0.0  ;;  %v1214_v45 = vmul.f32 0.1, %v1003_v39  ;;  %v1309_v11 = vsel %vm1181_vm1, %v1080_v38, %v1245_v40  ;;  %v1945_v38 = vld [vmem:[%s2110_s30 + $0xe4] sm:$0xf0]  ;;  %v1716_v40 = vor.u32 %v1946_v32, %v1713_v33 }
  0xef   : > { %v2363_v47 = vpop.f32.mrf.mxu1  ;;  %v1373_v62 = vpack.c.bf16 %v1309_v11, %v1309_v11  ;;  %v913_v48 = vpop.f32.mrf.mxu2 }
  0xf0   : > { %v1278_v46 = vsel %vm1150_vm3, %v1003_v39, %v1214_v45  ;;  %v914_v43 = vadd.f32 %v2226_v2, %v913_v48  ;;  %v1831_v45 = vld [vmem:[%s2110_s30 + $0x1e0] sm:$0xf] }
  0xf1   : > { %v1342_v49 = vpack.c.bf16 %v1278_v46, %v1278_v46  ;;  %v835_v50 = vpop.f32.mrf.mxu0  ;;  %1438 = vst.msk [vmem:[%s2239_s23 + $0x9c] sm:$0xf] %vm1398_vm4, %v1373_v62  ;;  %v1977_v46 = vld [vmem:[%s2110_s30 + $0x1e4] sm:$0xf0] }
  0xf2   : > { %v836_v51 = vadd.f32 %v2226_v2, %v835_v50  ;;  %v1083_v54 = vadd.f32 %v2293_v19, %v914_v43  ;;  %v1844_v19 = vor.u32 %v1978_v59, %v1841_v60  ;;  %v1832_v53 = vor.u32 %v1977_v46, %v1831_v45 }
  0xf3   : > { %1407 = vst.msk [vmem:[%s2239_s23 + $0x20] sm:$0xf] %vm1398_vm4, %v1342_v49 }
  0xf4   : > { %v1005_v57 = vadd.f32 %v2329_v3, %v836_v51  ;;  %vm1182_vm5 = vcmp.gt.f32.partialorder %v1083_v54, 0.0  ;;  %v1246_v63 = vmul.f32 0.1, %v1083_v54 }
  0xf5   : > { %v2383_v6 = vpop.f32.mrf.mxu3 }
  0xf6   : > { %vm1151_vm6 = vcmp.gt.f32.partialorder %v1005_v57, 0.0  ;;  %v1215_v1 = vmul.f32 0.1, %v1005_v57  ;;  %v1310_v7 = vsel %vm1182_vm5, %v1083_v54, %v1246_v63 }
  0xf7   : > { %v2380_v55 = vpop.f32.mrf.mxu1  ;;  %v1374_v8 = vpack.c.bf16 %v1310_v7, %v1310_v7  ;;  %v915_v9 = vpop.f32.mrf.mxu2 }
  0xf8   : > { %v1279_v3 = vsel %vm1151_vm6, %v1005_v57, %v1215_v1  ;;  %v916_v13 = vadd.f32 %v2226_v2, %v915_v9 }
  0xf9   : > { %v1343_v12 = vpack.c.bf16 %v1279_v3, %v1279_v3  ;;  %v838_v14 = vpop.f32.mrf.mxu0  ;;  %1439 = vst.msk [vmem:[%s2239_s23 + $0xa0] sm:$0xf] %vm1398_vm4, %v1374_v8  ;;  %v1948_v8 = vld [vmem:[%s2110_s30 + $0x104] sm:$0xf]  ;;  %v1721_v3 = vld [vmem:[%s2110_s30 + $0x108] sm:$0xf0] }
  0xfa   : > { %1895 = vmatmul.msk.bf16.gmra.mxu1 %vm700_vm2, %v1708_v4  ;;  %v839_v17 = vadd.f32 %v2226_v2, %v838_v14  ;;  %1912 = vmatmul.msk.bf16.gmra.mxu3 %vm700_vm2, %v1844_v19  ;;  %v1085_v18 = vadd.f32 %v2312_v44, %v916_v13  ;;  %v1947_v13 = vld [vmem:[%s2110_s30 + $0xf4] sm:$0xf0] }
  0xfb   : > { %1408 = vst.msk [vmem:[%s2239_s23 + $0x24] sm:$0xf] %vm1398_vm4, %v1343_v12  ;;  %v1711_v12 = vld [vmem:[%s2110_s30 + $0xf0] sm:$0xf] }
  0xfc   : > { %v1008_v20 = vadd.f32 %v2348_v25, %v839_v17  ;;  %877 = vmatmul.bf16.gmra.mxu0 %v1696_v10  ;;  %vm1183_vm7 = vcmp.gt.f32.partialorder %v1085_v18, 0.0  ;;  %v1247_v22 = vmul.f32 0.1, %v1085_v18  ;;  %957 = vmatmul.bf16.gmra.mxu2 %v1824_v16  ;;  %v1724_v17 = vor.u32 %v1948_v8, %v1721_v3 }
  0xfd   : > { %v2395_v44 = vpop.f32.mrf.mxu3 }
  0xfe   : > { %vm1152_vm8 = vcmp.gt.f32.partialorder %v1008_v20, 0.0  ;;  %v1216_v0 = vmul.f32 0.1, %v1008_v20  ;;  %v1311_v26 = vsel %vm1183_vm7, %v1085_v18, %v1247_v22  ;;  %v1839_v18 = vld [vmem:[%s2110_s30 + $0x1f0] sm:$0xf] }
  0xff   : > { %v1014_v24 = vpop.f32.mrf.mxu1  ;;  %v1375_v41 = vpack.c.bf16 %v1311_v26, %v1311_v26  ;;  %v918_v29 = vpop.f32.mrf.mxu2 }
 0x100   : > { %v1280_v27 = vsel %vm1152_vm8, %v1008_v20, %v1216_v0  ;;  %v919_v21 = vadd.f32 %v2226_v2, %v918_v29  ;;  %v1979_v0 = vld [vmem:[%s2110_s30 + $0x1f4] sm:$0xf0] }
 0x101   : > { %v1344_v25 = vpack.c.bf16 %v1280_v27, %v1280_v27  ;;  %v840_v30 = vpop.f32.mrf.mxu0  ;;  %1440 = vst.msk [vmem:[%s2239_s23 + $0xa4] sm:$0xf] %vm1398_vm4, %v1375_v41 }
 0x102   : > { %v841_v31 = vadd.f32 %v2226_v2, %v840_v30  ;;  %v1088_v35 = vadd.f32 %v2327_v61, %v919_v21  ;;  %v1704_v61 = vor.u32 %v1945_v38, %v1703_v37  ;;  %v1840_v30 = vor.u32 %v1979_v0, %v1839_v18 }
 0x103   : > { %1409 = vst.msk [vmem:[%s2239_s23 + $0x28] sm:$0xf] %vm1398_vm4, %v1344_v25 }
 0x104   : > { %v1010_v36 = vadd.f32 %v2363_v47, %v841_v31  ;;  %vm1184_vm9 = vcmp.gt.f32.partialorder %v1088_v35, 0.0  ;;  %v1248_v39 = vmul.f32 0.1, %v1088_v35 }
 0x105   : > { %v2418_v56 = vpop.f32.mrf.mxu3 }
 0x106   : > { %vm1153_vm10 = vcmp.gt.f32.partialorder %v1010_v36, 0.0  ;;  %v1217_v11 = vmul.f32 0.1, %v1010_v36  ;;  %v1312_v48 = vsel %vm1184_vm9, %v1088_v35, %v1248_v39 }
 0x107   : > { %v2410_v62 = vpop.f32.mrf.mxu1  ;;  %v1376_v49 = vpack.c.bf16 %v1312_v48, %v1312_v48  ;;  %v920_v50 = vpop.f32.mrf.mxu2 }
 0x108   : > { %v1281_v43 = vsel %vm1153_vm10, %v1010_v36, %v1217_v11  ;;  %v921_v47 = vadd.f32 %v2226_v2, %v920_v50 }
 0x109   : > { %v1345_v51 = vpack.c.bf16 %v1281_v43, %v1281_v43  ;;  %v843_v52 = vpop.f32.mrf.mxu0  ;;  %1441 = vst.msk [vmem:[%s2239_s23 + $0xa8] sm:$0xf] %vm1398_vm4, %v1376_v49 }
 0x10a   : > { %1896 = vmatmul.msk.bf16.gmra.mxu1 %vm700_vm2, %v1716_v40  ;;  %v844_v54 = vadd.f32 %v2226_v2, %v843_v52  ;;  %v1090_v57 = vadd.f32 %v2346_v23, %v921_v47 }
 0x10b   : > { %1410 = vst.msk [vmem:[%s2239_s23 + $0x2c] sm:$0xf] %vm1398_vm4, %v1345_v51 }
 0x10c   : > { %v1013_v58 = vadd.f32 %v2380_v55, %v844_v54  ;;  %882 = vmatmul.bf16.gmra.mxu0 %v1704_v61  ;;  %vm1185_vm11 = vcmp.gt.f32.partialorder %v1090_v57, 0.0  ;;  %v1249_v59 = vmul.f32 0.1, %v1090_v57  ;;  %962 = vmatmul.bf16.gmra.mxu2 %v1832_v53 }
 0x10d   : > { %v2435_v14 = vpop.f32.mrf.mxu3 }
 0x10e   : > { %vm1154_vm12 = vcmp.gt.f32.partialorder %v1013_v58, 0.0  ;;  %v1218_v60 = vmul.f32 0.1, %v1013_v58  ;;  %v1313_v4 = vsel %vm1185_vm11, %v1090_v57, %v1249_v59 }
 0x10f   : > { %v1019_v63 = vpop.f32.mrf.mxu1  ;;  %v1377_v28 = vpack.c.bf16 %v1313_v4, %v1313_v4  ;;  %v923_v5 = vpop.f32.mrf.mxu2 }
 0x110   : > { %v1282_v1 = vsel %vm1154_vm12, %v1013_v58, %v1218_v60  ;;  %v924_v55 = vadd.f32 %v2226_v2, %v923_v5 }
 0x111   : > { %v1346_v23 = vpack.c.bf16 %v1282_v1, %v1282_v1  ;;  %v845_v19 = vpop.f32.mrf.mxu0  ;;  %1442 = vst.msk [vmem:[%s2239_s23 + $0xac] sm:$0xf] %vm1398_vm4, %v1377_v28 }
 0x112   : > { %v846_v7 = vadd.f32 %v2226_v2, %v845_v19  ;;  %v1093_v9 = vadd.f32 %v2361_v42, %v924_v55  ;;  %v1712_v42 = vor.u32 %v1947_v13, %v1711_v12 }
 0x113   : > { %1411 = vst.msk [vmem:[%s2239_s23 + $0x30] sm:$0xf] %vm1398_vm4, %v1346_v23 }
 0x114   : > { %v1015_v10 = vadd.f32 %v1014_v24, %v846_v7  ;;  %vm1186_vm13 = vcmp.gt.f32.partialorder %v1093_v9, 0.0  ;;  %v1250_v16 = vmul.f32 0.1, %v1093_v9 }
 0x115   : > { %v2448_v38 = vpop.f32.mrf.mxu3 }
 0x116   : > { %vm1155_vm14 = vcmp.gt.f32.partialorder %v1015_v10, 0.0  ;;  %v1219_v20 = vmul.f32 0.1, %v1015_v10  ;;  %v1314_v26 = vsel %vm1186_vm13, %v1093_v9, %v1250_v16 }
 0x117   : > { %v1022_v22 = vpop.f32.mrf.mxu1  ;;  %v1378_v41 = vpack.c.bf16 %v1314_v26, %v1314_v26  ;;  %v925_v29 = vpop.f32.mrf.mxu2 }
 0x118   : > { %v1283_v27 = vsel %vm1155_vm14, %v1015_v10, %v1219_v20  ;;  %v926_v25 = vadd.f32 %v2226_v2, %v925_v29 }
 0x119   : > { %v1347_v24 = vpack.c.bf16 %v1283_v27, %v1283_v27  ;;  %v848_v21 = vpop.f32.mrf.mxu0  ;;  %1443 = vst.msk [vmem:[%s2239_s23 + $0xb0] sm:$0xf] %vm1398_vm4, %v1378_v41 }
 0x11a   : > { %1897 = vmatmul.msk.bf16.gmra.mxu1 %vm700_vm2, %v1724_v17  ;;  %v849_v31 = vadd.f32 %v2226_v2, %v848_v21  ;;  %v1095_v32 = vadd.f32 %v2383_v6, %v926_v25 }
 0x11b   : > { %1412 = vst.msk [vmem:[%s2239_s23 + $0x34] sm:$0xf] %vm1398_vm4, %v1347_v24 }
 0x11c   : > { %v1018_v33 = vadd.f32 %v2410_v62, %v849_v31  ;;  %887 = vmatmul.bf16.gmra.mxu0 %v1712_v42  ;;  %vm1187_vm15 = vcmp.gt.f32.partialorder %v1095_v32, 0.0  ;;  %v1251_v35 = vmul.f32 0.1, %v1095_v32  ;;  %967 = vmatmul.bf16.gmra.mxu2 %v1840_v30 }
 0x11d   : > { %v1107_v57 = vpop.f32.mrf.mxu3 }
 0x11e   : > { %vm1156_vm0 = vcmp.gt.f32.partialorder %v1018_v33, 0.0  ;;  %v1220_v36 = vmul.f32 0.1, %v1018_v33  ;;  %v1315_v39 = vsel %vm1187_vm15, %v1095_v32, %v1251_v35 }
 0x11f   : > { %v1024_v37 = vpop.f32.mrf.mxu1  ;;  %v1379_v40 = vpack.c.bf16 %v1315_v39, %v1315_v39  ;;  %v928_v11 = vpop.f32.mrf.mxu2 }
 0x120   : > { %v1284_v45 = vsel %vm1156_vm0, %v1018_v33, %v1220_v36  ;;  %v929_v6 = vadd.f32 %v2226_v2, %v928_v11 }
 0x121   : > { %v1348_v46 = vpack.c.bf16 %v1284_v45, %v1284_v45  ;;  %v850_v48 = vpop.f32.mrf.mxu0  ;;  %1444 = vst.msk [vmem:[%s2239_s23 + $0xb4] sm:$0xf] %vm1398_vm4, %v1379_v40 }
 0x122   : > { %v851_v62 = vadd.f32 %v2226_v2, %v850_v48  ;;  %v1098_v49 = vadd.f32 %v2395_v44, %v929_v6 }
 0x123   : > { %1413 = vst.msk [vmem:[%s2239_s23 + $0x38] sm:$0xf] %vm1398_vm4, %v1348_v46 }
 0x124   : > { %v1020_v43 = vadd.f32 %v1019_v63, %v851_v62  ;;  %vm1188_vm2 = vcmp.gt.f32.partialorder %v1098_v49, 0.0  ;;  %v1252_v50 = vmul.f32 0.1, %v1098_v49 }
 0x126   : > { %vm1157_vm1 = vcmp.gt.f32.partialorder %v1020_v43, 0.0  ;;  %v1221_v61 = vmul.f32 0.1, %v1020_v43  ;;  %v1316_v47 = vsel %vm1188_vm2, %v1098_v49, %v1252_v50 }
 0x127   : > { %v1027_v51 = vpop.f32.mrf.mxu1  ;;  %v1380_v52 = vpack.c.bf16 %v1316_v47, %v1316_v47  ;;  %v930_v54 = vpop.f32.mrf.mxu2 }
 0x128   : > { %v1285_v53 = vsel %vm1157_vm1, %v1020_v43, %v1221_v61  ;;  %v931_v59 = vadd.f32 %v2226_v2, %v930_v54 }
 0x129   : > { %v1349_v58 = vpack.c.bf16 %v1285_v53, %v1285_v53  ;;  %v853_v60 = vpop.f32.mrf.mxu0  ;;  %1445 = vst.msk [vmem:[%s2239_s23 + $0xb8] sm:$0xf] %vm1398_vm4, %v1380_v52 }
 0x12a   : > { %v854_v44 = vadd.f32 %v2226_v2, %v853_v60  ;;  %v1100_v63 = vadd.f32 %v2418_v56, %v931_v59  ;;  %v1109_v56 = vpop.f32.mrf.mxu3 }
 0x12b   : > { %1414 = vst.msk [vmem:[%s2239_s23 + $0x3c] sm:$0xf] %vm1398_vm4, %v1349_v58 }
 0x12c   : > { %v1023_v4 = vadd.f32 %v1022_v22, %v854_v44  ;;  %vm1189_vm3 = vcmp.gt.f32.partialorder %v1100_v63, 0.0  ;;  %v1253_v28 = vmul.f32 0.1, %v1100_v63 }
 0x12e   : > { %vm1158_vm5 = vcmp.gt.f32.partialorder %v1023_v4, 0.0  ;;  %v1222_v1 = vmul.f32 0.1, %v1023_v4  ;;  %v1317_v23 = vsel %vm1189_vm3, %v1100_v63, %v1253_v28 }
 0x12f   : > { %v1029_v5 = vpop.f32.mrf.mxu1  ;;  %v1381_v55 = vpack.c.bf16 %v1317_v23, %v1317_v23  ;;  %v933_v7 = vpop.f32.mrf.mxu2 }
 0x130   : > { %v1286_v19 = vsel %vm1158_vm5, %v1023_v4, %v1222_v1  ;;  %v934_v3 = vadd.f32 %v2226_v2, %v933_v7 }
 0x131   : > { %v1350_v8 = vpack.c.bf16 %v1286_v19, %v1286_v19  ;;  %v855_v9 = vpop.f32.mrf.mxu0  ;;  %1446 = vst.msk [vmem:[%s2239_s23 + $0xbc] sm:$0xf] %vm1398_vm4, %v1381_v55 }
 0x132   : > { %v856_v10 = vadd.f32 %v2226_v2, %v855_v9  ;;  %v1103_v12 = vadd.f32 %v2435_v14, %v934_v3  ;;  %v1112_v25 = vpop.f32.mrf.mxu3 }
 0x133   : > { %1415 = vst.msk [vmem:[%s2239_s23 + $0x40] sm:$0xf] %vm1398_vm4, %v1350_v8 }
 0x134   : > { %v1025_v13 = vadd.f32 %v1024_v37, %v856_v10  ;;  %vm1190_vm6 = vcmp.gt.f32.partialorder %v1103_v12, 0.0  ;;  %v1254_v16 = vmul.f32 0.1, %v1103_v12 }
 0x136   : > { %vm1159_vm7 = vcmp.gt.f32.partialorder %v1025_v13, 0.0  ;;  %v1223_v17 = vmul.f32 0.1, %v1025_v13  ;;  %v1318_v20 = vsel %vm1190_vm6, %v1103_v12, %v1254_v16 }
 0x137   : > { %v1032_v18 = vpop.f32.mrf.mxu1  ;;  %v1382_v22 = vpack.c.bf16 %v1318_v20, %v1318_v20  ;;  %v935_v26 = vpop.f32.mrf.mxu2 }
 0x138   : > { %v1287_v0 = vsel %vm1159_vm7, %v1025_v13, %v1223_v17  ;;  %v936_v27 = vadd.f32 %v2226_v2, %v935_v26 }
 0x139   : > { %v1351_v41 = vpack.c.bf16 %v1287_v0, %v1287_v0  ;;  %v858_v29 = vpop.f32.mrf.mxu0  ;;  %1447 = vst.msk [vmem:[%s2239_s23 + $0xc0] sm:$0xf] %vm1398_vm4, %v1382_v22 }
 0x13a   : > { %v859_v42 = vadd.f32 %v2226_v2, %v858_v29  ;;  %v1105_v14 = vadd.f32 %v2448_v38, %v936_v27  ;;  %v1114_v62 = vpop.f32.mrf.mxu3 }
 0x13b   : > { %1416 = vst.msk [vmem:[%s2239_s23 + $0x44] sm:$0xf] %vm1398_vm4, %v1351_v41 }
 0x13c   : > { %v1028_v24 = vadd.f32 %v1027_v51, %v859_v42  ;;  %vm1191_vm8 = vcmp.gt.f32.partialorder %v1105_v14, 0.0  ;;  %v1255_v21 = vmul.f32 0.1, %v1105_v14 }
 0x13e   : > { %vm1160_vm9 = vcmp.gt.f32.partialorder %v1028_v24, 0.0  ;;  %v1224_v30 = vmul.f32 0.1, %v1028_v24  ;;  %v1319_v32 = vsel %vm1191_vm8, %v1105_v14, %v1255_v21 }
 0x13f   : > { %v1034_v31 = vpop.f32.mrf.mxu1  ;;  %v1383_v33 = vpack.c.bf16 %v1319_v32, %v1319_v32  ;;  %v938_v36 = vpop.f32.mrf.mxu2 }
 0x140   : > { %v1288_v35 = vsel %vm1160_vm9, %v1028_v24, %v1224_v30  ;;  %v939_v39 = vadd.f32 %v2226_v2, %v938_v36 }
 0x141   : > { %v1352_v37 = vpack.c.bf16 %v1288_v35, %v1288_v35  ;;  %v860_v40 = vpop.f32.mrf.mxu0  ;;  %1448 = vst.msk [vmem:[%s2239_s23 + $0xc4] sm:$0xf] %vm1398_vm4, %v1383_v33 }
 0x142   : > { %v861_v38 = vadd.f32 %v2226_v2, %v860_v40  ;;  %v1108_v45 = vadd.f32 %v1107_v57, %v939_v39  ;;  %v1117_v1 = vpop.f32.mrf.mxu3 }
 0x143   : > { %1417 = vst.msk [vmem:[%s2239_s23 + $0x48] sm:$0xf] %vm1398_vm4, %v1352_v37 }
 0x144   : > { %v1030_v11 = vadd.f32 %v1029_v5, %v861_v38  ;;  %vm1192_vm10 = vcmp.gt.f32.partialorder %v1108_v45, 0.0  ;;  %v1256_v46 = vmul.f32 0.1, %v1108_v45 }
 0x146   : > { %vm1161_vm11 = vcmp.gt.f32.partialorder %v1030_v11, 0.0  ;;  %v1225_v6 = vmul.f32 0.1, %v1030_v11  ;;  %v1320_v49 = vsel %vm1192_vm10, %v1108_v45, %v1256_v46 }
 0x147   : > { %v1037_v48 = vpop.f32.mrf.mxu1  ;;  %v1384_v43 = vpack.c.bf16 %v1320_v49, %v1320_v49  ;;  %v940_v61 = vpop.f32.mrf.mxu2 }
 0x148   : > { %v1289_v50 = vsel %vm1161_vm11, %v1030_v11, %v1225_v6  ;;  %v941_v47 = vadd.f32 %v2226_v2, %v940_v61 }
 0x149   : > { %v1353_v51 = vpack.c.bf16 %v1289_v50, %v1289_v50  ;;  %v863_v52 = vpop.f32.mrf.mxu0  ;;  %1449 = vst.msk [vmem:[%s2239_s23 + $0xc8] sm:$0xf] %vm1398_vm4, %v1384_v43 }
 0x14a   : > { %v864_v53 = vadd.f32 %v2226_v2, %v863_v52  ;;  %v1110_v54 = vadd.f32 %v1109_v56, %v941_v47  ;;  %v1119_v0 = vpop.f32.mrf.mxu3 }
 0x14b   : > { %1418 = vst.msk [vmem:[%s2239_s23 + $0x4c] sm:$0xf] %vm1398_vm4, %v1353_v51 }
 0x14c   : > { %v1033_v57 = vadd.f32 %v1032_v18, %v864_v53  ;;  %vm1193_vm12 = vcmp.gt.f32.partialorder %v1110_v54, 0.0  ;;  %v1257_v58 = vmul.f32 0.1, %v1110_v54 }
 0x14e   : > { %vm1162_vm13 = vcmp.gt.f32.partialorder %v1033_v57, 0.0  ;;  %v1226_v59 = vmul.f32 0.1, %v1033_v57  ;;  %v1321_v44 = vsel %vm1193_vm12, %v1110_v54, %v1257_v58 }
 0x14f   : > { %v1039_v60 = vpop.f32.mrf.mxu1  ;;  %v1385_v63 = vpack.c.bf16 %v1321_v44, %v1321_v44  ;;  %v943_v28 = vpop.f32.mrf.mxu2 }
 0x150   : > { %v1290_v4 = vsel %vm1162_vm13, %v1033_v57, %v1226_v59  ;;  %v944_v23 = vadd.f32 %v2226_v2, %v943_v28 }
 0x151   : > { %v1354_v5 = vpack.c.bf16 %v1290_v4, %v1290_v4  ;;  %v865_v55 = vpop.f32.mrf.mxu0  ;;  %1450 = vst.msk [vmem:[%s2239_s23 + $0xcc] sm:$0xf] %vm1398_vm4, %v1385_v63 }
 0x152   : > { %v866_v19 = vadd.f32 %v2226_v2, %v865_v55  ;;  %v1113_v7 = vadd.f32 %v1112_v25, %v944_v23  ;;  %v1122_v37 = vpop.f32.mrf.mxu3 }
 0x153   : > { %1419 = vst.msk [vmem:[%s2239_s23 + $0x50] sm:$0xf] %vm1398_vm4, %v1354_v5 }
 0x154   : > { %v1035_v8 = vadd.f32 %v1034_v31, %v866_v19  ;;  %vm1194_vm14 = vcmp.gt.f32.partialorder %v1113_v7, 0.0  ;;  %v1258_v3 = vmul.f32 0.1, %v1113_v7 }
 0x156   : > { %vm1163_vm15 = vcmp.gt.f32.partialorder %v1035_v8, 0.0  ;;  %v1227_v9 = vmul.f32 0.1, %v1035_v8  ;;  %v1322_v56 = vsel %vm1194_vm14, %v1113_v7, %v1258_v3 }
 0x157   : > { %v1042_v10 = vpop.f32.mrf.mxu1  ;;  %v1386_v12 = vpack.c.bf16 %v1322_v56, %v1322_v56  ;;  %v945_v16 = vpop.f32.mrf.mxu2 }
 0x158   : > { %v1291_v13 = vsel %vm1163_vm15, %v1035_v8, %v1227_v9  ;;  %v946_v18 = vadd.f32 %v2226_v2, %v945_v16 }
 0x159   : > { %v1355_v17 = vpack.c.bf16 %v1291_v13, %v1291_v13  ;;  %v868_v20 = vpop.f32.mrf.mxu0  ;;  %1451 = vst.msk [vmem:[%s2239_s23 + $0xd0] sm:$0xf] %vm1398_vm4, %v1386_v12 }
 0x15a   : > { %v869_v22 = vadd.f32 %v2226_v2, %v868_v20  ;;  %v1115_v26 = vadd.f32 %v1114_v62, %v946_v18  ;;  %v1124_v53 = vpop.f32.mrf.mxu3 }
 0x15b   : > { %1420 = vst.msk [vmem:[%s2239_s23 + $0x54] sm:$0xf] %vm1398_vm4, %v1355_v17 }
 0x15c   : > { %v1038_v41 = vadd.f32 %v1037_v48, %v869_v22  ;;  %vm1195_vm0 = vcmp.gt.f32.partialorder %v1115_v26, 0.0  ;;  %v1259_v27 = vmul.f32 0.1, %v1115_v26 }
 0x15e   : > { %vm1164_vm2 = vcmp.gt.f32.partialorder %v1038_v41, 0.0  ;;  %v1228_v29 = vmul.f32 0.1, %v1038_v41  ;;  %v1323_v14 = vsel %vm1195_vm0, %v1115_v26, %v1259_v27 }
 0x15f   : > { %v1044_v42 = vpop.f32.mrf.mxu1  ;;  %v1387_v24 = vpack.c.bf16 %v1323_v14, %v1323_v14  ;;  %v948_v21 = vpop.f32.mrf.mxu2 }
 0x160   : > { %v1292_v25 = vsel %vm1164_vm2, %v1038_v41, %v1228_v29  ;;  %v949_v31 = vadd.f32 %v2226_v2, %v948_v21 }
 0x161   : > { %v1356_v30 = vpack.c.bf16 %v1292_v25, %v1292_v25  ;;  %v870_v32 = vpop.f32.mrf.mxu0  ;;  %1452 = vst.msk [vmem:[%s2239_s23 + $0xd4] sm:$0xf] %vm1398_vm4, %v1387_v24 }
 0x162   : > { %v871_v33 = vadd.f32 %v2226_v2, %v870_v32  ;;  %v1118_v35 = vadd.f32 %v1117_v1, %v949_v31  ;;  %v2511_v2 = vld [vmem:[%s2587_s2] ss:$0 sm:$0xff]  ;;  %v1127_v9 = vpop.f32.mrf.mxu3 }
 0x163   : > { %1421 = vst.msk [vmem:[%s2239_s23 + $0x58] sm:$0xf] %vm1398_vm4, %v1356_v30 }
 0x164   : > { %v1040_v36 = vadd.f32 %v1039_v60, %v871_v33  ;;  %vm1196_vm1 = vcmp.gt.f32.partialorder %v1118_v35, 0.0  ;;  %v1260_v39 = vmul.f32 0.1, %v1118_v35 }
 0x166   : > { %vm1165_vm3 = vcmp.gt.f32.partialorder %v1040_v36, 0.0  ;;  %v1229_v40 = vmul.f32 0.1, %v1040_v36  ;;  %v1324_v45 = vsel %vm1196_vm1, %v1118_v35, %v1260_v39 }
 0x167   : > { %v1047_v38 = vpop.f32.mrf.mxu1  ;;  %v1388_v11 = vpack.c.bf16 %v1324_v45, %v1324_v45  ;;  %v950_v6 = vpop.f32.mrf.mxu2 }
 0x168   : > { %v1293_v46 = vsel %vm1165_vm3, %v1040_v36, %v1229_v40  ;;  %v951_v62 = vadd.f32 %v2511_v2, %v950_v6 }
 0x169   : > { %v1357_v48 = vpack.c.bf16 %v1293_v46, %v1293_v46  ;;  %v873_v49 = vpop.f32.mrf.mxu0  ;;  %1453 = vst.msk [vmem:[%s2239_s23 + $0xd8] sm:$0xf] %vm1398_vm4, %v1388_v11 }
 0x16a   : > { %v874_v43 = vadd.f32 %v2511_v2, %v873_v49  ;;  %v1120_v50 = vadd.f32 %v1119_v0, %v951_v62  ;;  %v1129_v25 = vpop.f32.mrf.mxu3 }
 0x16b   : > { %1422 = vst.msk [vmem:[%s2239_s23 + $0x5c] sm:$0xf] %vm1398_vm4, %v1357_v48 }
 0x16c   : > { %v1043_v61 = vadd.f32 %v1042_v10, %v874_v43  ;;  %vm1197_vm5 = vcmp.gt.f32.partialorder %v1120_v50, 0.0  ;;  %v1261_v51 = vmul.f32 0.1, %v1120_v50 }
 0x16e   : > { %vm1166_vm6 = vcmp.gt.f32.partialorder %v1043_v61, 0.0  ;;  %v1230_v47 = vmul.f32 0.1, %v1043_v61  ;;  %v1325_v54 = vsel %vm1197_vm5, %v1120_v50, %v1261_v51 }
 0x16f   : > { %v1049_v52 = vpop.f32.mrf.mxu1  ;;  %v1389_v57 = vpack.c.bf16 %v1325_v54, %v1325_v54  ;;  %v953_v59 = vpop.f32.mrf.mxu2 }
 0x170   : > { %v1294_v58 = vsel %vm1166_vm6, %v1043_v61, %v1230_v47  ;;  %v954_v44 = vadd.f32 %v2511_v2, %v953_v59 }
 0x171   : > { %v1358_v60 = vpack.c.bf16 %v1294_v58, %v1294_v58  ;;  %v875_v63 = vpop.f32.mrf.mxu0  ;;  %1454 = vst.msk [vmem:[%s2239_s23 + $0xdc] sm:$0xf] %vm1398_vm4, %v1389_v57 }
 0x172   : > { %v876_v4 = vadd.f32 %v2511_v2, %v875_v63  ;;  %v1123_v28 = vadd.f32 %v1122_v37, %v954_v44  ;;  %v1132_v48 = vpop.f32.mrf.mxu3 }
 0x173   : > { %1423 = vst.msk [vmem:[%s2239_s23 + $0x60] sm:$0xf] %vm1398_vm4, %v1358_v60  ;;  %v894_v60 = vadd.f32 %v2511_v2, %v2241_v15 }
 0x174   : > { %v1045_v1 = vadd.f32 %v1044_v42, %v876_v4  ;;  %vm1198_vm7 = vcmp.gt.f32.partialorder %v1123_v28, 0.0  ;;  %v1262_v5 = vmul.f32 0.1, %v1123_v28 }
 0x176   : > { %vm1167_vm8 = vcmp.gt.f32.partialorder %v1045_v1, 0.0  ;;  %v1231_v23 = vmul.f32 0.1, %v1045_v1  ;;  %v1326_v19 = vsel %vm1198_vm7, %v1123_v28, %v1262_v5 }
 0x177   : > { %v1052_v55 = vpop.f32.mrf.mxu1  ;;  %v1390_v7 = vpack.c.bf16 %v1326_v19, %v1326_v19  ;;  %v955_v3 = vpop.f32.mrf.mxu2 }
 0x178   : > { %v1295_v8 = vsel %vm1167_vm8, %v1045_v1, %v1231_v23  ;;  %v956_v56 = vadd.f32 %v2511_v2, %v955_v3 }
 0x179   : > { %v1359_v10 = vpack.c.bf16 %v1295_v8, %v1295_v8  ;;  %v878_v12 = vpop.f32.mrf.mxu0  ;;  %1455 = vst.msk [vmem:[%s2239_s23 + $0xe0] sm:$0xf] %vm1398_vm4, %v1390_v7 }
 0x17a   : > { %v879_v13 = vadd.f32 %v2511_v2, %v878_v12  ;;  %v1125_v16 = vadd.f32 %v1124_v53, %v956_v56  ;;  %v1134_v4 = vpop.f32.mrf.mxu3 }
 0x17b   : > { %1424 = vst.msk [vmem:[%s2239_s23 + $0x64] sm:$0xf] %vm1398_vm4, %v1359_v10 }
 0x17c   : > { %v1048_v17 = vadd.f32 %v1047_v38, %v879_v13  ;;  %vm1199_vm9 = vcmp.gt.f32.partialorder %v1125_v16, 0.0  ;;  %v1263_v18 = vmul.f32 0.1, %v1125_v16 }
 0x17e   : > { %vm1168_vm10 = vcmp.gt.f32.partialorder %v1048_v17, 0.0  ;;  %v1232_v20 = vmul.f32 0.1, %v1048_v17  ;;  %v1327_v0 = vsel %vm1199_vm9, %v1125_v16, %v1263_v18  ;;  %v896_v16 = vadd.f32 %v2511_v2, %v2256_v34 }
 0x17f   : > { %v1054_v22 = vpop.f32.mrf.mxu1  ;;  %v1391_v26 = vpack.c.bf16 %v1327_v0, %v1327_v0  ;;  %v958_v27 = vpop.f32.mrf.mxu2 }
 0x180   : > { %v1296_v41 = vsel %vm1168_vm10, %v1048_v17, %v1232_v20  ;;  %v959_v42 = vadd.f32 %v2511_v2, %v958_v27 }
 0x181   : > { %v1360_v29 = vpack.c.bf16 %v1296_v41, %v1296_v41  ;;  %v880_v14 = vpop.f32.mrf.mxu0  ;;  %1456 = vst.msk [vmem:[%s2239_s23 + $0xe4] sm:$0xf] %vm1398_vm4, %v1391_v26 }
 0x182   : > { %v881_v24 = vadd.f32 %v2511_v2, %v880_v14  ;;  %v1128_v21 = vadd.f32 %v1127_v9, %v959_v42  ;;  %v1137_v27 = vpop.f32.mrf.mxu3 }
 0x183   : > { %1425 = vst.msk [vmem:[%s2239_s23 + $0x68] sm:$0xf] %vm1398_vm4, %v1360_v29 }
 0x184   : > { %v1050_v30 = vadd.f32 %v1049_v52, %v881_v24  ;;  %vm1200_vm11 = vcmp.gt.f32.partialorder %v1128_v21, 0.0  ;;  %v1264_v31 = vmul.f32 0.1, %v1128_v21 }
 0x186   : > { %vm1169_vm12 = vcmp.gt.f32.partialorder %v1050_v30, 0.0  ;;  %v1233_v32 = vmul.f32 0.1, %v1050_v30  ;;  %v1328_v35 = vsel %vm1200_vm11, %v1128_v21, %v1264_v31 }
 0x187   : > { %v1057_v33 = vpop.f32.mrf.mxu1  ;;  %v1392_v36 = vpack.c.bf16 %v1328_v35, %v1328_v35  ;;  %v960_v39 = vpop.f32.mrf.mxu2 }
 0x188   : > { %v1297_v37 = vsel %vm1169_vm12, %v1050_v30, %v1233_v32  ;;  %v961_v38 = vadd.f32 %v2511_v2, %v960_v39 }
 0x189   : > { %v1361_v40 = vpack.c.bf16 %v1297_v37, %v1297_v37  ;;  %v883_v45 = vpop.f32.mrf.mxu0  ;;  %1457 = vst.msk [vmem:[%s2239_s23 + $0xe8] sm:$0xf] %vm1398_vm4, %v1392_v36 }
 0x18a   : > { %v884_v11 = vadd.f32 %v2511_v2, %v883_v45  ;;  %v1130_v46 = vadd.f32 %v1129_v25, %v961_v38 }
 0x18b   : > { %1426 = vst.msk [vmem:[%s2239_s23 + $0x6c] sm:$0xf] %vm1398_vm4, %v1361_v40 }
 0x18c   : > { %v1053_v6 = vadd.f32 %v1052_v55, %v884_v11  ;;  %vm1201_vm13 = vcmp.gt.f32.partialorder %v1130_v46, 0.0  ;;  %v1265_v62 = vmul.f32 0.1, %v1130_v46  ;;  %v1139_v11 = vpop.f32.mrf.mxu3 }
 0x18e   : > { %vm1170_vm14 = vcmp.gt.f32.partialorder %v1053_v6, 0.0  ;;  %v1234_v49 = vmul.f32 0.1, %v1053_v6  ;;  %v1329_v50 = vsel %vm1201_vm13, %v1130_v46, %v1265_v62 }
 0x18f   : > { %v1059_v43 = vpop.f32.mrf.mxu1  ;;  %v1393_v61 = vpack.c.bf16 %v1329_v50, %v1329_v50  ;;  %v963_v47 = vpop.f32.mrf.mxu2 }
 0x190   : > { %v1298_v51 = vsel %vm1170_vm14, %v1053_v6, %v1234_v49  ;;  %v964_v53 = vadd.f32 %v2511_v2, %v963_v47 }
 0x191   : > { %v1362_v52 = vpack.c.bf16 %v1298_v51, %v1298_v51  ;;  %v885_v54 = vpop.f32.mrf.mxu0  ;;  %1458 = vst.msk [vmem:[%s2239_s23 + $0xec] sm:$0xf] %vm1398_vm4, %v1393_v61 }
 0x192   : > { %v886_v57 = vadd.f32 %v2511_v2, %v885_v54  ;;  %v1133_v58 = vadd.f32 %v1132_v48, %v964_v53 }
 0x193   : > { %1427 = vst.msk [vmem:[%s2239_s23 + $0x70] sm:$0xf] %vm1398_vm4, %v1362_v52 }
 0x194   : > { %v1055_v59 = vadd.f32 %v1054_v22, %v886_v57  ;;  %vm1202_vm15 = vcmp.gt.f32.partialorder %v1133_v58, 0.0  ;;  %v1266_v44 = vmul.f32 0.1, %v1133_v58 }
 0x196   : > { %vm1171_vm0 = vcmp.gt.f32.partialorder %v1055_v59, 0.0  ;;  %v1235_v63 = vmul.f32 0.1, %v1055_v59  ;;  %v1330_v1 = vsel %vm1202_vm15, %v1133_v58, %v1266_v44 }
 0x197   : > { %v1062_v28 = vpop.f32.mrf.mxu1  ;;  %v1394_v23 = vpack.c.bf16 %v1330_v1, %v1330_v1  ;;  %v965_v19 = vpop.f32.mrf.mxu2 }
 0x198   : > { %v1063_v5 = vadd.f32 %v1062_v28, %v894_v60  ;;  %v1299_v55 = vsel %vm1171_vm0, %v1055_v59, %v1235_v63  ;;  %v966_v3 = vadd.f32 %v2511_v2, %v965_v19 }
 0x199   : > { %v1363_v7 = vpack.c.bf16 %v1299_v55, %v1299_v55  ;;  %v888_v15 = vpop.f32.mrf.mxu0  ;;  %1459 = vst.msk [vmem:[%s2239_s23 + $0xf0] sm:$0xf] %vm1398_vm4, %v1394_v23 }
 0x19a   : > { %vm1174_vm2 = vcmp.gt.f32.partialorder %v1063_v5, 0.0  ;;  %v1238_v8 = vmul.f32 0.1, %v1063_v5  ;;  %v889_v9 = vadd.f32 %v2511_v2, %v888_v15  ;;  %v1135_v56 = vadd.f32 %v1134_v4, %v966_v3 }
 0x19b   : > { %1428 = vst.msk [vmem:[%s2239_s23 + $0x74] sm:$0xf] %vm1398_vm4, %v1363_v7 }
 0x19c   : > { %v1302_v10 = vsel %vm1174_vm2, %v1063_v5, %v1238_v8  ;;  %v1058_v13 = vadd.f32 %v1057_v33, %v889_v9  ;;  %vm1203_vm1 = vcmp.gt.f32.partialorder %v1135_v56, 0.0  ;;  %v1267_v17 = vmul.f32 0.1, %v1135_v56 }
 0x19d   : > { %v1366_v12 = vpack.c.bf16 %v1302_v10, %v1302_v10 }
 0x19e   : > { %vm1172_vm3 = vcmp.gt.f32.partialorder %v1058_v13, 0.0  ;;  %v1236_v18 = vmul.f32 0.1, %v1058_v13  ;;  %v1331_v22 = vsel %vm1203_vm1, %v1135_v56, %v1267_v17 }
 0x19f   : > { %1431 = vst.msk [vmem:[%s2239_s23 + $0x80] sm:$0xf] %vm1398_vm4, %v1366_v12  ;;  %v1064_v20 = vpop.f32.mrf.mxu1  ;;  %v1395_v26 = vpack.c.bf16 %v1331_v22, %v1331_v22  ;;  %v968_v29 = vpop.f32.mrf.mxu2 }
 0x1a0   : > { %v1065_v0 = vadd.f32 %v1064_v20, %v896_v16  ;;  %v1300_v41 = vsel %vm1172_vm3, %v1058_v13, %v1236_v18  ;;  %v969_v34 = vadd.f32 %v2511_v2, %v968_v29 }
 0x1a1   : > { %v1364_v42 = vpack.c.bf16 %v1300_v41, %v1300_v41  ;;  %v890_v24 = vpop.f32.mrf.mxu0  ;;  %1460 = vst.msk [vmem:[%s2239_s23 + $0xf4] sm:$0xf] %vm1398_vm4, %v1395_v26 }
 0x1a2   : > { %vm1175_vm5 = vcmp.gt.f32.partialorder %v1065_v0, 0.0  ;;  %v1239_v14 = vmul.f32 0.1, %v1065_v0  ;;  %v891_v25 = vadd.f32 %v2511_v2, %v890_v24  ;;  %v1138_v30 = vadd.f32 %v1137_v27, %v969_v34 }
 0x1a3   : > { %1429 = vst.msk [vmem:[%s2239_s23 + $0x78] sm:$0xf] %vm1398_vm4, %v1364_v42 }
 0x1a4   : > { %v1303_v21 = vsel %vm1175_vm5, %v1065_v0, %v1239_v14  ;;  %v1060_v32 = vadd.f32 %v1059_v43, %v891_v25  ;;  %vm1204_vm6 = vcmp.gt.f32.partialorder %v1138_v30, 0.0  ;;  %v1268_v33 = vmul.f32 0.1, %v1138_v30 }
 0x1a5   : > { %v1367_v31 = vpack.c.bf16 %v1303_v21, %v1303_v21 }
 0x1a6   : > { %vm1173_vm7 = vcmp.gt.f32.partialorder %v1060_v32, 0.0  ;;  %v1237_v35 = vmul.f32 0.1, %v1060_v32  ;;  %v1332_v36 = vsel %vm1204_vm6, %v1138_v30, %v1268_v33 }
 0x1a7   : > { %1432 = vst.msk [vmem:[%s2239_s23 + $0x84] sm:$0xf] %vm1398_vm4, %v1367_v31  ;;  %v1396_v37 = vpack.c.bf16 %v1332_v36, %v1332_v36  ;;  %v970_v40 = vpop.f32.mrf.mxu2 }
 0x1a8   : > { %v1301_v39 = vsel %vm1173_vm7, %v1060_v32, %v1237_v35  ;;  %v971_v45 = vadd.f32 %v2511_v2, %v970_v40 }
 0x1a9   : > { %v1365_v38 = vpack.c.bf16 %v1301_v39, %v1301_v39  ;;  %1461 = vst.msk [vmem:[%s2239_s23 + $0xf8] sm:$0xf] %vm1398_vm4, %v1396_v37 }
 0x1aa   : > { %v1140_v46 = vadd.f32 %v1139_v11, %v971_v45 }
 0x1ab   : > { %1430 = vst.msk [vmem:[%s2239_s23 + $0x7c] sm:$0xf] %vm1398_vm4, %v1365_v38 }
 0x1ac   : > { %vm1205_vm8 = vcmp.gt.f32.partialorder %v1140_v46, 0.0  ;;  %v1269_v6 = vmul.f32 0.1, %v1140_v46 }
 0x1ae   : > { %v1333_v48 = vsel %vm1205_vm8, %v1140_v46, %v1269_v6 }
 0x1af   : > { %v1397_v62 = vpack.c.bf16 %v1333_v48, %v1333_v48 }
 0x1b1   : > { %1462 = vst.msk [vmem:[%s2239_s23 + $0xfc] sm:$0xf] %vm1398_vm4, %v1397_v62 }
 0x1b2 PF: > { %s13_s14 = sadd.s32 1, %s2048_s14   ;;  %s2589_s12 = smov %s2044_s13 }
 0x1b3   : > { %p10_p5 = scmp.ge.s32.totalorder %s13_s14, 6   ;;  %s2590_s13 = smov %s2592_s15 }
 0x1b5   :  { %12 = sbr.rel (!%p10_p5) target bundleno = 2 (0x2), region = 68 }

</bundles_post_ra>
